<compile_context>
chip_gen: v7x
topology: tpu7x:2x2x1
jax: 0.10.0
libtpu: 0.0.40
codegen_flags: <defaults>
</compile_context>

<pallas_src>
import jax
import jax.numpy as jnp
from jax import lax
from jax.experimental import pallas as pl
from jax.experimental.pallas import tpu as pltpu


BATCH_PAD = 8  # sublane tile: per-step row blocks are (8, lanes)


def _round_up(x, m):
    return ((x + m - 1) // m) * m


# --------------------------------------------------------------------------
# Fused kernel: all LSTM layers + final Linear in one pallas_call
# --------------------------------------------------------------------------
def _make_fused_kernel(num_layers, seq_len, hidden):
    T, Bp, H = seq_len, BATCH_PAD, hidden

    def kernel(*refs):
        # refs = [x_ref, (w_ih, w_hh, bias) * num_layers, w_lin, b_lin, out_ref]
        x_ref = refs[0]
        layer_refs = refs[1:1 + 3 * num_layers]
        w_lin_ref = refs[1 + 3 * num_layers]
        b_lin_ref = refs[2 + 3 * num_layers]
        out_ref = refs[3 + 3 * num_layers]

        x_in = x_ref[...]                              # (T*Bp, D_in) bf16
        hb = None
        for layer in range(num_layers):
            w_ih = layer_refs[3 * layer][...]          # (D_l, 4H) bf16, g cols x2
            w_hh = layer_refs[3 * layer + 1][...]      # (H, 4H)   bf16, g cols x2
            b = layer_refs[3 * layer + 2][...]         # (1, 4H)   f32,  g lanes x2

            # Hoisted input projection: one batched GEMM + bias (off the serial
            # h->h critical path).
            xproj = jnp.dot(x_in, w_ih, preferred_element_type=jnp.float32) + b

            c = jnp.zeros((Bp, H), jnp.float32)
            last_layer = layer == num_layers - 1
            hs = []

            # Fully unrolled time loop (T static & small): h/c live in vregs;
            # the recurrence body is ONE fused (Bp,H)@(H,4H) MXU matmul plus
            # one packed sigmoid, one tanh and a handful of VPU ops.
            for t in range(T):
                r0 = t * Bp                            # static (8,128)-aligned
                pre = xproj[r0:r0 + Bp, :]
                if t > 0:                              # h0 == 0 -> skip matmul
                    pre = pre + jnp.dot(
                        hb, w_hh, preferred_element_type=jnp.float32)
                # One sigmoid over all 4 gate blocks (4H = 128 lanes).
                s = jax.nn.sigmoid(pre)
                i_g = s[:, 0 * H:1 * H]
                f_g = s[:, 1 * H:2 * H]
                g_g = s[:, 2 * H:3 * H] * 2.0 - 1.0    # tanh(x)=2*sigmoid(2x)-1
                o_g = s[:, 3 * H:4 * H]
                c = f_g * c + i_g * g_g
                h = o_g * jnp.tanh(c)
                hb = h.astype(jnp.bfloat16)
                if not last_layer:
                    hs.append(h)                       # register-carried output

            if not last_layer:
                # Whole-layer activation stays in vregs; one concat + cast feeds
                # the next layer's hoisted input GEMM (no VMEM scratch stores).
                x_in = jnp.concatenate(hs, axis=0).astype(jnp.bfloat16)

        # Fused final Linear on the last hidden state; lane-dense 128-wide block.
        out_ref[...] = (
            jnp.dot(hb, w_lin_ref[...], preferred_element_type=jnp.float32)
            + b_lin_ref[...])

    return kernel


# --------------------------------------------------------------------------
# Wrapper
# --------------------------------------------------------------------------
def lstm_model_forward(x, params):
    """x: (B, input_size, seq_len) — same layout as the PyTorch module input."""
    B, d_in, T = x.shape
    H = params["hidden_size"]
    L = params["num_layers"]
    num_classes = params["num_classes"]
    c_pad = params["b_lin"].shape[-1]
    Bp = BATCH_PAD
    assert B <= Bp, "pad/tile over batch not implemented for B > 8"

    # permute(0,2,1) -> time-major -> pad batch to the 8-row sublane tile ->
    # flatten (T, Bp) -> (T*Bp, D).  bf16 cast on the host halves layer-0 DMA.
    xt = jnp.transpose(x, (2, 0, 1))                   # (T, B, D)
    xt = jnp.pad(xt, ((0, 0), (0, Bp - B), (0, 0)))    # (T, Bp, D), zero rows
    x_flat = xt.reshape(T * Bp, d_in).astype(jnp.bfloat16)

    flat_layer_params = []
    for (w_ih, w_hh, b) in params["layers"]:
        flat_layer_params += [w_ih, w_hh, b]

    n_in = 1 + 3 * L + 2
    kernel = _make_fused_kernel(L, T, H)

    out_padded = pl.pallas_call(
        kernel,
        out_shape=jax.ShapeDtypeStruct((Bp, c_pad), jnp.float32),
        in_specs=[pl.BlockSpec(memory_space=pltpu.MemorySpace.VMEM)] * n_in,
        out_specs=pl.BlockSpec(memory_space=pltpu.MemorySpace.VMEM),
    )(x_flat, *flat_layer_params, params["w_lin"], params["b_lin"])

    return out_padded[:B, :num_classes]


# --------------------------------------------------------------------------
# Parameters (shapes / init range matching nn.LSTM + nn.Linear)
# --------------------------------------------------------------------------
def init_params(key, input_size, hidden_size, num_layers, num_classes):
    assert num_layers >= 1
    H = hidden_size
    params = {"layers": [], "layers_ref": [], "hidden_size": H,
              "num_layers": num_layers, "num_classes": num_classes}
    k = 1.0 / (hidden_size ** 0.5)

    # Lane scale that doubles the g-gate block (PyTorch gate order: i, f, g, o),
    # folding the *2 of tanh(x) = 2*sigmoid(2x) - 1 into the weights/bias.
    gate_double = jnp.concatenate(
        [jnp.ones((1, 2 * H), jnp.float32),
         jnp.full((1, H), 2.0, jnp.float32),
         jnp.ones((1, H), jnp.float32)], axis=1)       # (1, 4H)

    for layer in range(num_layers):
        d_in = input_size if layer == 0 else H
        key, k1, k2, k3, k4 = jax.random.split(key, 5)
        w_ih = jax.random.uniform(k1, (4 * H, d_in), jnp.float32, -k, k)
        w_hh = jax.random.uniform(k2, (4 * H, H), jnp.float32, -k, k)
        b_ih = jax.random.uniform(k3, (4 * H,), jnp.float32, -k, k)
        b_hh = jax.random.uniform(k4, (4 * H,), jnp.float32, -k, k)

        w_ih_bf = w_ih.T.astype(jnp.bfloat16)          # (d_in, 4H)
        w_hh_bf = w_hh.T.astype(jnp.bfloat16)          # (H, 4H) — single matrix
        bias = (b_ih + b_hh).reshape(1, 4 * H)         # (1, 4H) f32

        # Kernel copies: g-gate columns/lanes doubled (exact in bf16).
        w_ih_k = (w_ih_bf.astype(jnp.float32) * gate_double).astype(jnp.bfloat16)
        w_hh_k = (w_hh_bf.astype(jnp.float32) * gate_double).astype(jnp.bfloat16)
        bias_k = bias * gate_double

        params["layers"].append((w_ih_k, w_hh_k, bias_k))
        # Reference copies: same bf16-quantized weights, undoubled, f32 math.
        params["layers_ref"].append(
            (w_ih_bf.astype(jnp.float32), w_hh_bf.astype(jnp.float32), bias))

    key, k1, k2 = jax.random.split(key, 3)
    w_lin = jax.random.uniform(k1, (num_classes, H), jnp.float32, -k, k)
    b_lin = jax.random.uniform(k2, (num_classes,), jnp.float32, -k, k)
    # Lane-dense (padded to a multiple of 128) output for the fused Linear.
    c_pad = _round_up(max(num_classes, 128), 128)
    w_lin_bf = w_lin.T.astype(jnp.bfloat16)            # (H, C)
    params["w_lin"] = jnp.zeros((H, c_pad), jnp.bfloat16
                                ).at[:, :num_classes].set(w_lin_bf)
    params["b_lin"] = jnp.zeros((1, c_pad), jnp.float32
                                ).at[:, :num_classes].set(b_lin)
    params["w_lin_ref"] = w_lin_bf.astype(jnp.float32)
    params["b_lin_ref"] = b_lin
    return params


# --------------------------------------------------------------------------
# Pure-JAX reference (same bf16-quantized weights, f32 math, real tanh)
# --------------------------------------------------------------------------
def lstm_model_reference(x, params):
    H = params["hidden_size"]
    B = x.shape[0]
    xs = jnp.transpose(x, (2, 0, 1))                   # (T, B, D)
    h = None
    for (w_ih, w_hh, b) in params["layers_ref"]:

        def step(carry, x_t, w_ih=w_ih, w_hh=w_hh, b=b):
            h, c = carry
            gates = x_t @ w_ih + h @ w_hh + b[0]
            i = jax.nn.sigmoid(gates[:, 0 * H:1 * H])
            f = jax.nn.sigmoid(gates[:, 1 * H:2 * H])
            g = jnp.tanh(gates[:, 2 * H:3 * H])
            o = jax.nn.sigmoid(gates[:, 3 * H:4 * H])
            c = f * c + i * g
            h = o * jnp.tanh(c)
            return (h, c), h

        init = (jnp.zeros((B, H), jnp.float32), jnp.zeros((B, H), jnp.float32))
        (h, _), xs = lax.scan(step, init, xs)
    return h @ params["w_lin_ref"] + params["b_lin_ref"]


# --------------------------------------------------------------------------
if __name__ == "__main__":
    INPUT_SIZE = 4
    HIDDEN = 32
    NUM_LAYERS = 2
    NUM_CLASSES = 10
    BATCH = 2
    SEQ = 8

    key = jax.random.PRNGKey(0)
    key, xkey = jax.random.split(key)
    x = jax.random.normal(xkey, (BATCH, INPUT_SIZE, SEQ), jnp.float32)

    params = init_params(key, INPUT_SIZE, HIDDEN, NUM_LAYERS, NUM_CLASSES)

    out = lstm_model_forward(x, params)
    jax.block_until_ready(out)
    assert out.shape == (BATCH, NUM_CLASSES), out.shape
    assert bool(jnp.all(jnp.isfinite(out)))

    # Loose tolerance: kernel uses bf16 MXU operands / bf16 recurrent h and the
    # tanh-as-scaled-sigmoid identity; reference keeps f32 math.
    ref = lstm_model_reference(x, params)
    assert bool(jnp.allclose(out, ref, atol=5e-2, rtol=5e-2)), (
        float(jnp.max(jnp.abs(out - ref))))

    print("KERNEL_OK")
</pallas_src>

<mosaic_0001>
module attributes {stable_mosaic.version = 11 : i64} {
  func.func @kernel(%arg0: memref<64x4xbf16, #tpu.memory_space<vmem>>, %arg1: memref<4x128xbf16, #tpu.memory_space<vmem>>, %arg2: memref<32x128xbf16, #tpu.memory_space<vmem>>, %arg3: memref<1x128xf32, #tpu.memory_space<vmem>>, %arg4: memref<32x128xbf16, #tpu.memory_space<vmem>>, %arg5: memref<32x128xbf16, #tpu.memory_space<vmem>>, %arg6: memref<1x128xf32, #tpu.memory_space<vmem>>, %arg7: memref<32x128xbf16, #tpu.memory_space<vmem>>, %arg8: memref<1x128xf32, #tpu.memory_space<vmem>>, %arg9: memref<8x128xf32, #tpu.memory_space<vmem>>) attributes {dimension_semantics = [], scalar_prefetch = 0 : i64, scratch_operands = 0 : i64, tpu.core_type = #tpu.core_type<tc>} {
    %c0 = arith.constant 0 : index
    %c0_0 = arith.constant 0 : index
    %0 = vector.load %arg0[%c0, %c0_0] : memref<64x4xbf16, #tpu.memory_space<vmem>>, vector<64x4xbf16>
    %c0_1 = arith.constant 0 : index
    %c0_2 = arith.constant 0 : index
    %1 = vector.load %arg1[%c0_1, %c0_2] : memref<4x128xbf16, #tpu.memory_space<vmem>>, vector<4x128xbf16>
    %c0_3 = arith.constant 0 : index
    %c0_4 = arith.constant 0 : index
    %2 = vector.load %arg2[%c0_3, %c0_4] : memref<32x128xbf16, #tpu.memory_space<vmem>>, vector<32x128xbf16>
    %c0_5 = arith.constant 0 : index
    %c0_6 = arith.constant 0 : index
    %3 = vector.load %arg3[%c0_5, %c0_6] : memref<1x128xf32, #tpu.memory_space<vmem>>, vector<1x128xf32>
    %cst = arith.constant dense<0.000000e+00> : vector<64x128xf32>
    %4 = tpu.matmul %0, %1, %cst {dimension_numbers = #tpu.dot_dimension_numbers<[1], [0], [0], [1], [0, 0, 1, 1], [], []>} : vector<64x4xbf16>, vector<4x128xbf16>, vector<64x128xf32> -> vector<64x128xf32>
    %5 = vector.broadcast %3 : vector<1x128xf32> to vector<64x128xf32>
    %6 = arith.addf %4, %5 : vector<64x128xf32>
    %cst_7 = arith.constant 0.000000e+00 : f32
    %7 = vector.broadcast %cst_7 : f32 to vector<8x32xf32>
    %8 = vector.extract_strided_slice %6 {offsets = [0, 0], sizes = [8, 128], strides = [1, 1]} : vector<64x128xf32> to vector<8x128xf32>
    %9 = arith.negf %8 : vector<8x128xf32>
    %10 = math.exp %9 : vector<8x128xf32>
    %cst_8 = arith.constant 1.000000e+00 : f32
    %11 = vector.broadcast %cst_8 : f32 to vector<8x128xf32>
    %12 = arith.addf %11, %10 : vector<8x128xf32>
    %13 = arith.divf %11, %12 : vector<8x128xf32>
    %14 = vector.extract_strided_slice %13 {offsets = [0, 0], sizes = [8, 32], strides = [1, 1]} : vector<8x128xf32> to vector<8x32xf32>
    %15 = vector.extract_strided_slice %13 {offsets = [0, 32], sizes = [8, 32], strides = [1, 1]} : vector<8x128xf32> to vector<8x32xf32>
    %16 = vector.extract_strided_slice %13 {offsets = [0, 64], sizes = [8, 32], strides = [1, 1]} : vector<8x128xf32> to vector<8x32xf32>
    %cst_9 = arith.constant 2.000000e+00 : f32
    %17 = vector.broadcast %cst_9 : f32 to vector<8x32xf32>
    %18 = arith.mulf %16, %17 : vector<8x32xf32>
    %cst_10 = arith.constant 1.000000e+00 : f32
    %19 = vector.broadcast %cst_10 : f32 to vector<8x32xf32>
    %20 = arith.subf %18, %19 : vector<8x32xf32>
    %21 = vector.extract_strided_slice %13 {offsets = [0, 96], sizes = [8, 32], strides = [1, 1]} : vector<8x128xf32> to vector<8x32xf32>
    %22 = arith.mulf %15, %7 : vector<8x32xf32>
    %23 = arith.mulf %14, %20 : vector<8x32xf32>
    %24 = arith.addf %22, %23 : vector<8x32xf32>
    %25 = math.tanh %24 : vector<8x32xf32>
    %26 = arith.mulf %21, %25 : vector<8x32xf32>
    %27 = arith.truncf %26 : vector<8x32xf32> to vector<8x32xbf16>
    %28 = vector.extract_strided_slice %6 {offsets = [8, 0], sizes = [8, 128], strides = [1, 1]} : vector<64x128xf32> to vector<8x128xf32>
    %cst_11 = arith.constant dense<0.000000e+00> : vector<8x128xf32>
    %29 = tpu.matmul %27, %2, %cst_11 {dimension_numbers = #tpu.dot_dimension_numbers<[1], [0], [0], [1], [0, 0, 1, 1], [], []>} : vector<8x32xbf16>, vector<32x128xbf16>, vector<8x128xf32> -> vector<8x128xf32>
    %30 = arith.addf %28, %29 : vector<8x128xf32>
    %31 = arith.negf %30 : vector<8x128xf32>
    %32 = math.exp %31 : vector<8x128xf32>
    %cst_12 = arith.constant 1.000000e+00 : f32
    %33 = vector.broadcast %cst_12 : f32 to vector<8x128xf32>
    %34 = arith.addf %33, %32 : vector<8x128xf32>
    %35 = arith.divf %33, %34 : vector<8x128xf32>
    %36 = vector.extract_strided_slice %35 {offsets = [0, 0], sizes = [8, 32], strides = [1, 1]} : vector<8x128xf32> to vector<8x32xf32>
    %37 = vector.extract_strided_slice %35 {offsets = [0, 32], sizes = [8, 32], strides = [1, 1]} : vector<8x128xf32> to vector<8x32xf32>
    %38 = vector.extract_strided_slice %35 {offsets = [0, 64], sizes = [8, 32], strides = [1, 1]} : vector<8x128xf32> to vector<8x32xf32>
    %cst_13 = arith.constant 2.000000e+00 : f32
    %39 = vector.broadcast %cst_13 : f32 to vector<8x32xf32>
    %40 = arith.mulf %38, %39 : vector<8x32xf32>
    %cst_14 = arith.constant 1.000000e+00 : f32
    %41 = vector.broadcast %cst_14 : f32 to vector<8x32xf32>
    %42 = arith.subf %40, %41 : vector<8x32xf32>
    %43 = vector.extract_strided_slice %35 {offsets = [0, 96], sizes = [8, 32], strides = [1, 1]} : vector<8x128xf32> to vector<8x32xf32>
    %44 = arith.mulf %37, %24 : vector<8x32xf32>
    %45 = arith.mulf %36, %42 : vector<8x32xf32>
    %46 = arith.addf %44, %45 : vector<8x32xf32>
    %47 = math.tanh %46 : vector<8x32xf32>
    %48 = arith.mulf %43, %47 : vector<8x32xf32>
    %49 = arith.truncf %48 : vector<8x32xf32> to vector<8x32xbf16>
    %50 = vector.extract_strided_slice %6 {offsets = [16, 0], sizes = [8, 128], strides = [1, 1]} : vector<64x128xf32> to vector<8x128xf32>
    %cst_15 = arith.constant dense<0.000000e+00> : vector<8x128xf32>
    %51 = tpu.matmul %49, %2, %cst_15 {dimension_numbers = #tpu.dot_dimension_numbers<[1], [0], [0], [1], [0, 0, 1, 1], [], []>} : vector<8x32xbf16>, vector<32x128xbf16>, vector<8x128xf32> -> vector<8x128xf32>
    %52 = arith.addf %50, %51 : vector<8x128xf32>
    %53 = arith.negf %52 : vector<8x128xf32>
    %54 = math.exp %53 : vector<8x128xf32>
    %cst_16 = arith.constant 1.000000e+00 : f32
    %55 = vector.broadcast %cst_16 : f32 to vector<8x128xf32>
    %56 = arith.addf %55, %54 : vector<8x128xf32>
    %57 = arith.divf %55, %56 : vector<8x128xf32>
    %58 = vector.extract_strided_slice %57 {offsets = [0, 0], sizes = [8, 32], strides = [1, 1]} : vector<8x128xf32> to vector<8x32xf32>
    %59 = vector.extract_strided_slice %57 {offsets = [0, 32], sizes = [8, 32], strides = [1, 1]} : vector<8x128xf32> to vector<8x32xf32>
    %60 = vector.extract_strided_slice %57 {offsets = [0, 64], sizes = [8, 32], strides = [1, 1]} : vector<8x128xf32> to vector<8x32xf32>
    %cst_17 = arith.constant 2.000000e+00 : f32
    %61 = vector.broadcast %cst_17 : f32 to vector<8x32xf32>
    %62 = arith.mulf %60, %61 : vector<8x32xf32>
    %cst_18 = arith.constant 1.000000e+00 : f32
    %63 = vector.broadcast %cst_18 : f32 to vector<8x32xf32>
    %64 = arith.subf %62, %63 : vector<8x32xf32>
    %65 = vector.extract_strided_slice %57 {offsets = [0, 96], sizes = [8, 32], strides = [1, 1]} : vector<8x128xf32> to vector<8x32xf32>
    %66 = arith.mulf %59, %46 : vector<8x32xf32>
    %67 = arith.mulf %58, %64 : vector<8x32xf32>
    %68 = arith.addf %66, %67 : vector<8x32xf32>
    %69 = math.tanh %68 : vector<8x32xf32>
    %70 = arith.mulf %65, %69 : vector<8x32xf32>
    %71 = arith.truncf %70 : vector<8x32xf32> to vector<8x32xbf16>
    %72 = vector.extract_strided_slice %6 {offsets = [24, 0], sizes = [8, 128], strides = [1, 1]} : vector<64x128xf32> to vector<8x128xf32>
    %cst_19 = arith.constant dense<0.000000e+00> : vector<8x128xf32>
    %73 = tpu.matmul %71, %2, %cst_19 {dimension_numbers = #tpu.dot_dimension_numbers<[1], [0], [0], [1], [0, 0, 1, 1], [], []>} : vector<8x32xbf16>, vector<32x128xbf16>, vector<8x128xf32> -> vector<8x128xf32>
    %74 = arith.addf %72, %73 : vector<8x128xf32>
    %75 = arith.negf %74 : vector<8x128xf32>
    %76 = math.exp %75 : vector<8x128xf32>
    %cst_20 = arith.constant 1.000000e+00 : f32
    %77 = vector.broadcast %cst_20 : f32 to vector<8x128xf32>
    %78 = arith.addf %77, %76 : vector<8x128xf32>
    %79 = arith.divf %77, %78 : vector<8x128xf32>
    %80 = vector.extract_strided_slice %79 {offsets = [0, 0], sizes = [8, 32], strides = [1, 1]} : vector<8x128xf32> to vector<8x32xf32>
    %81 = vector.extract_strided_slice %79 {offsets = [0, 32], sizes = [8, 32], strides = [1, 1]} : vector<8x128xf32> to vector<8x32xf32>
    %82 = vector.extract_strided_slice %79 {offsets = [0, 64], sizes = [8, 32], strides = [1, 1]} : vector<8x128xf32> to vector<8x32xf32>
    %cst_21 = arith.constant 2.000000e+00 : f32
    %83 = vector.broadcast %cst_21 : f32 to vector<8x32xf32>
    %84 = arith.mulf %82, %83 : vector<8x32xf32>
    %cst_22 = arith.constant 1.000000e+00 : f32
    %85 = vector.broadcast %cst_22 : f32 to vector<8x32xf32>
    %86 = arith.subf %84, %85 : vector<8x32xf32>
    %87 = vector.extract_strided_slice %79 {offsets = [0, 96], sizes = [8, 32], strides = [1, 1]} : vector<8x128xf32> to vector<8x32xf32>
    %88 = arith.mulf %81, %68 : vector<8x32xf32>
    %89 = arith.mulf %80, %86 : vector<8x32xf32>
    %90 = arith.addf %88, %89 : vector<8x32xf32>
    %91 = math.tanh %90 : vector<8x32xf32>
    %92 = arith.mulf %87, %91 : vector<8x32xf32>
    %93 = arith.truncf %92 : vector<8x32xf32> to vector<8x32xbf16>
    %94 = vector.extract_strided_slice %6 {offsets = [32, 0], sizes = [8, 128], strides = [1, 1]} : vector<64x128xf32> to vector<8x128xf32>
    %cst_23 = arith.constant dense<0.000000e+00> : vector<8x128xf32>
    %95 = tpu.matmul %93, %2, %cst_23 {dimension_numbers = #tpu.dot_dimension_numbers<[1], [0], [0], [1], [0, 0, 1, 1], [], []>} : vector<8x32xbf16>, vector<32x128xbf16>, vector<8x128xf32> -> vector<8x128xf32>
    %96 = arith.addf %94, %95 : vector<8x128xf32>
    %97 = arith.negf %96 : vector<8x128xf32>
    %98 = math.exp %97 : vector<8x128xf32>
    %cst_24 = arith.constant 1.000000e+00 : f32
    %99 = vector.broadcast %cst_24 : f32 to vector<8x128xf32>
    %100 = arith.addf %99, %98 : vector<8x128xf32>
    %101 = arith.divf %99, %100 : vector<8x128xf32>
    %102 = vector.extract_strided_slice %101 {offsets = [0, 0], sizes = [8, 32], strides = [1, 1]} : vector<8x128xf32> to vector<8x32xf32>
    %103 = vector.extract_strided_slice %101 {offsets = [0, 32], sizes = [8, 32], strides = [1, 1]} : vector<8x128xf32> to vector<8x32xf32>
    %104 = vector.extract_strided_slice %101 {offsets = [0, 64], sizes = [8, 32], strides = [1, 1]} : vector<8x128xf32> to vector<8x32xf32>
    %cst_25 = arith.constant 2.000000e+00 : f32
    %105 = vector.broadcast %cst_25 : f32 to vector<8x32xf32>
    %106 = arith.mulf %104, %105 : vector<8x32xf32>
    %cst_26 = arith.constant 1.000000e+00 : f32
    %107 = vector.broadcast %cst_26 : f32 to vector<8x32xf32>
    %108 = arith.subf %106, %107 : vector<8x32xf32>
    %109 = vector.extract_strided_slice %101 {offsets = [0, 96], sizes = [8, 32], strides = [1, 1]} : vector<8x128xf32> to vector<8x32xf32>
    %110 = arith.mulf %103, %90 : vector<8x32xf32>
    %111 = arith.mulf %102, %108 : vector<8x32xf32>
    %112 = arith.addf %110, %111 : vector<8x32xf32>
    %113 = math.tanh %112 : vector<8x32xf32>
    %114 = arith.mulf %109, %113 : vector<8x32xf32>
    %115 = arith.truncf %114 : vector<8x32xf32> to vector<8x32xbf16>
    %116 = vector.extract_strided_slice %6 {offsets = [40, 0], sizes = [8, 128], strides = [1, 1]} : vector<64x128xf32> to vector<8x128xf32>
    %cst_27 = arith.constant dense<0.000000e+00> : vector<8x128xf32>
    %117 = tpu.matmul %115, %2, %cst_27 {dimension_numbers = #tpu.dot_dimension_numbers<[1], [0], [0], [1], [0, 0, 1, 1], [], []>} : vector<8x32xbf16>, vector<32x128xbf16>, vector<8x128xf32> -> vector<8x128xf32>
    %118 = arith.addf %116, %117 : vector<8x128xf32>
    %119 = arith.negf %118 : vector<8x128xf32>
    %120 = math.exp %119 : vector<8x128xf32>
    %cst_28 = arith.constant 1.000000e+00 : f32
    %121 = vector.broadcast %cst_28 : f32 to vector<8x128xf32>
    %122 = arith.addf %121, %120 : vector<8x128xf32>
    %123 = arith.divf %121, %122 : vector<8x128xf32>
    %124 = vector.extract_strided_slice %123 {offsets = [0, 0], sizes = [8, 32], strides = [1, 1]} : vector<8x128xf32> to vector<8x32xf32>
    %125 = vector.extract_strided_slice %123 {offsets = [0, 32], sizes = [8, 32], strides = [1, 1]} : vector<8x128xf32> to vector<8x32xf32>
    %126 = vector.extract_strided_slice %123 {offsets = [0, 64], sizes = [8, 32], strides = [1, 1]} : vector<8x128xf32> to vector<8x32xf32>
    %cst_29 = arith.constant 2.000000e+00 : f32
    %127 = vector.broadcast %cst_29 : f32 to vector<8x32xf32>
    %128 = arith.mulf %126, %127 : vector<8x32xf32>
    %cst_30 = arith.constant 1.000000e+00 : f32
    %129 = vector.broadcast %cst_30 : f32 to vector<8x32xf32>
    %130 = arith.subf %128, %129 : vector<8x32xf32>
    %131 = vector.extract_strided_slice %123 {offsets = [0, 96], sizes = [8, 32], strides = [1, 1]} : vector<8x128xf32> to vector<8x32xf32>
    %132 = arith.mulf %125, %112 : vector<8x32xf32>
    %133 = arith.mulf %124, %130 : vector<8x32xf32>
    %134 = arith.addf %132, %133 : vector<8x32xf32>
    %135 = math.tanh %134 : vector<8x32xf32>
    %136 = arith.mulf %131, %135 : vector<8x32xf32>
    %137 = arith.truncf %136 : vector<8x32xf32> to vector<8x32xbf16>
    %138 = vector.extract_strided_slice %6 {offsets = [48, 0], sizes = [8, 128], strides = [1, 1]} : vector<64x128xf32> to vector<8x128xf32>
    %cst_31 = arith.constant dense<0.000000e+00> : vector<8x128xf32>
    %139 = tpu.matmul %137, %2, %cst_31 {dimension_numbers = #tpu.dot_dimension_numbers<[1], [0], [0], [1], [0, 0, 1, 1], [], []>} : vector<8x32xbf16>, vector<32x128xbf16>, vector<8x128xf32> -> vector<8x128xf32>
    %140 = arith.addf %138, %139 : vector<8x128xf32>
    %141 = arith.negf %140 : vector<8x128xf32>
    %142 = math.exp %141 : vector<8x128xf32>
    %cst_32 = arith.constant 1.000000e+00 : f32
    %143 = vector.broadcast %cst_32 : f32 to vector<8x128xf32>
    %144 = arith.addf %143, %142 : vector<8x128xf32>
    %145 = arith.divf %143, %144 : vector<8x128xf32>
    %146 = vector.extract_strided_slice %145 {offsets = [0, 0], sizes = [8, 32], strides = [1, 1]} : vector<8x128xf32> to vector<8x32xf32>
    %147 = vector.extract_strided_slice %145 {offsets = [0, 32], sizes = [8, 32], strides = [1, 1]} : vector<8x128xf32> to vector<8x32xf32>
    %148 = vector.extract_strided_slice %145 {offsets = [0, 64], sizes = [8, 32], strides = [1, 1]} : vector<8x128xf32> to vector<8x32xf32>
    %cst_33 = arith.constant 2.000000e+00 : f32
    %149 = vector.broadcast %cst_33 : f32 to vector<8x32xf32>
    %150 = arith.mulf %148, %149 : vector<8x32xf32>
    %cst_34 = arith.constant 1.000000e+00 : f32
    %151 = vector.broadcast %cst_34 : f32 to vector<8x32xf32>
    %152 = arith.subf %150, %151 : vector<8x32xf32>
    %153 = vector.extract_strided_slice %145 {offsets = [0, 96], sizes = [8, 32], strides = [1, 1]} : vector<8x128xf32> to vector<8x32xf32>
    %154 = arith.mulf %147, %134 : vector<8x32xf32>
    %155 = arith.mulf %146, %152 : vector<8x32xf32>
    %156 = arith.addf %154, %155 : vector<8x32xf32>
    %157 = math.tanh %156 : vector<8x32xf32>
    %158 = arith.mulf %153, %157 : vector<8x32xf32>
    %159 = arith.truncf %158 : vector<8x32xf32> to vector<8x32xbf16>
    %160 = vector.extract_strided_slice %6 {offsets = [56, 0], sizes = [8, 128], strides = [1, 1]} : vector<64x128xf32> to vector<8x128xf32>
    %cst_35 = arith.constant dense<0.000000e+00> : vector<8x128xf32>
    %161 = tpu.matmul %159, %2, %cst_35 {dimension_numbers = #tpu.dot_dimension_numbers<[1], [0], [0], [1], [0, 0, 1, 1], [], []>} : vector<8x32xbf16>, vector<32x128xbf16>, vector<8x128xf32> -> vector<8x128xf32>
    %162 = arith.addf %160, %161 : vector<8x128xf32>
    %163 = arith.negf %162 : vector<8x128xf32>
    %164 = math.exp %163 : vector<8x128xf32>
    %cst_36 = arith.constant 1.000000e+00 : f32
    %165 = vector.broadcast %cst_36 : f32 to vector<8x128xf32>
    %166 = arith.addf %165, %164 : vector<8x128xf32>
    %167 = arith.divf %165, %166 : vector<8x128xf32>
    %168 = vector.extract_strided_slice %167 {offsets = [0, 0], sizes = [8, 32], strides = [1, 1]} : vector<8x128xf32> to vector<8x32xf32>
    %169 = vector.extract_strided_slice %167 {offsets = [0, 32], sizes = [8, 32], strides = [1, 1]} : vector<8x128xf32> to vector<8x32xf32>
    %170 = vector.extract_strided_slice %167 {offsets = [0, 64], sizes = [8, 32], strides = [1, 1]} : vector<8x128xf32> to vector<8x32xf32>
    %cst_37 = arith.constant 2.000000e+00 : f32
    %171 = vector.broadcast %cst_37 : f32 to vector<8x32xf32>
    %172 = arith.mulf %170, %171 : vector<8x32xf32>
    %cst_38 = arith.constant 1.000000e+00 : f32
    %173 = vector.broadcast %cst_38 : f32 to vector<8x32xf32>
    %174 = arith.subf %172, %173 : vector<8x32xf32>
    %175 = vector.extract_strided_slice %167 {offsets = [0, 96], sizes = [8, 32], strides = [1, 1]} : vector<8x128xf32> to vector<8x32xf32>
    %176 = arith.mulf %169, %156 : vector<8x32xf32>
    %177 = arith.mulf %168, %174 : vector<8x32xf32>
    %178 = arith.addf %176, %177 : vector<8x32xf32>
    %179 = math.tanh %178 : vector<8x32xf32>
    %180 = arith.mulf %175, %179 : vector<8x32xf32>
    %181 = tpu.concatenate %26, %48, %70, %92, %114, %136, %158, %180 in 0 : vector<8x32xf32>, vector<8x32xf32>, vector<8x32xf32>, vector<8x32xf32>, vector<8x32xf32>, vector<8x32xf32>, vector<8x32xf32>, vector<8x32xf32> -> vector<64x32xf32>
    %182 = arith.truncf %181 : vector<64x32xf32> to vector<64x32xbf16>
    %c0_39 = arith.constant 0 : index
    %c0_40 = arith.constant 0 : index
    %183 = vector.load %arg4[%c0_39, %c0_40] : memref<32x128xbf16, #tpu.memory_space<vmem>>, vector<32x128xbf16>
    %c0_41 = arith.constant 0 : index
    %c0_42 = arith.constant 0 : index
    %184 = vector.load %arg5[%c0_41, %c0_42] : memref<32x128xbf16, #tpu.memory_space<vmem>>, vector<32x128xbf16>
    %c0_43 = arith.constant 0 : index
    %c0_44 = arith.constant 0 : index
    %185 = vector.load %arg6[%c0_43, %c0_44] : memref<1x128xf32, #tpu.memory_space<vmem>>, vector<1x128xf32>
    %cst_45 = arith.constant dense<0.000000e+00> : vector<64x128xf32>
    %186 = tpu.matmul %182, %183, %cst_45 {dimension_numbers = #tpu.dot_dimension_numbers<[1], [0], [0], [1], [0, 0, 1, 1], [], []>} : vector<64x32xbf16>, vector<32x128xbf16>, vector<64x128xf32> -> vector<64x128xf32>
    %187 = vector.broadcast %185 : vector<1x128xf32> to vector<64x128xf32>
    %188 = arith.addf %186, %187 : vector<64x128xf32>
    %cst_46 = arith.constant 0.000000e+00 : f32
    %189 = vector.broadcast %cst_46 : f32 to vector<8x32xf32>
    %190 = vector.extract_strided_slice %188 {offsets = [0, 0], sizes = [8, 128], strides = [1, 1]} : vector<64x128xf32> to vector<8x128xf32>
    %191 = arith.negf %190 : vector<8x128xf32>
    %192 = math.exp %191 : vector<8x128xf32>
    %cst_47 = arith.constant 1.000000e+00 : f32
    %193 = vector.broadcast %cst_47 : f32 to vector<8x128xf32>
    %194 = arith.addf %193, %192 : vector<8x128xf32>
    %195 = arith.divf %193, %194 : vector<8x128xf32>
    %196 = vector.extract_strided_slice %195 {offsets = [0, 0], sizes = [8, 32], strides = [1, 1]} : vector<8x128xf32> to vector<8x32xf32>
    %197 = vector.extract_strided_slice %195 {offsets = [0, 32], sizes = [8, 32], strides = [1, 1]} : vector<8x128xf32> to vector<8x32xf32>
    %198 = vector.extract_strided_slice %195 {offsets = [0, 64], sizes = [8, 32], strides = [1, 1]} : vector<8x128xf32> to vector<8x32xf32>
    %cst_48 = arith.constant 2.000000e+00 : f32
    %199 = vector.broadcast %cst_48 : f32 to vector<8x32xf32>
    %200 = arith.mulf %198, %199 : vector<8x32xf32>
    %cst_49 = arith.constant 1.000000e+00 : f32
    %201 = vector.broadcast %cst_49 : f32 to vector<8x32xf32>
    %202 = arith.subf %200, %201 : vector<8x32xf32>
    %203 = vector.extract_strided_slice %195 {offsets = [0, 96], sizes = [8, 32], strides = [1, 1]} : vector<8x128xf32> to vector<8x32xf32>
    %204 = arith.mulf %197, %189 : vector<8x32xf32>
    %205 = arith.mulf %196, %202 : vector<8x32xf32>
    %206 = arith.addf %204, %205 : vector<8x32xf32>
    %207 = math.tanh %206 : vector<8x32xf32>
    %208 = arith.mulf %203, %207 : vector<8x32xf32>
    %209 = arith.truncf %208 : vector<8x32xf32> to vector<8x32xbf16>
    %210 = vector.extract_strided_slice %188 {offsets = [8, 0], sizes = [8, 128], strides = [1, 1]} : vector<64x128xf32> to vector<8x128xf32>
    %cst_50 = arith.constant dense<0.000000e+00> : vector<8x128xf32>
    %211 = tpu.matmul %209, %184, %cst_50 {dimension_numbers = #tpu.dot_dimension_numbers<[1], [0], [0], [1], [0, 0, 1, 1], [], []>} : vector<8x32xbf16>, vector<32x128xbf16>, vector<8x128xf32> -> vector<8x128xf32>
    %212 = arith.addf %210, %211 : vector<8x128xf32>
    %213 = arith.negf %212 : vector<8x128xf32>
    %214 = math.exp %213 : vector<8x128xf32>
    %cst_51 = arith.constant 1.000000e+00 : f32
    %215 = vector.broadcast %cst_51 : f32 to vector<8x128xf32>
    %216 = arith.addf %215, %214 : vector<8x128xf32>
    %217 = arith.divf %215, %216 : vector<8x128xf32>
    %218 = vector.extract_strided_slice %217 {offsets = [0, 0], sizes = [8, 32], strides = [1, 1]} : vector<8x128xf32> to vector<8x32xf32>
    %219 = vector.extract_strided_slice %217 {offsets = [0, 32], sizes = [8, 32], strides = [1, 1]} : vector<8x128xf32> to vector<8x32xf32>
    %220 = vector.extract_strided_slice %217 {offsets = [0, 64], sizes = [8, 32], strides = [1, 1]} : vector<8x128xf32> to vector<8x32xf32>
    %cst_52 = arith.constant 2.000000e+00 : f32
    %221 = vector.broadcast %cst_52 : f32 to vector<8x32xf32>
    %222 = arith.mulf %220, %221 : vector<8x32xf32>
    %cst_53 = arith.constant 1.000000e+00 : f32
    %223 = vector.broadcast %cst_53 : f32 to vector<8x32xf32>
    %224 = arith.subf %222, %223 : vector<8x32xf32>
    %225 = vector.extract_strided_slice %217 {offsets = [0, 96], sizes = [8, 32], strides = [1, 1]} : vector<8x128xf32> to vector<8x32xf32>
    %226 = arith.mulf %219, %206 : vector<8x32xf32>
    %227 = arith.mulf %218, %224 : vector<8x32xf32>
    %228 = arith.addf %226, %227 : vector<8x32xf32>
    %229 = math.tanh %228 : vector<8x32xf32>
    %230 = arith.mulf %225, %229 : vector<8x32xf32>
    %231 = arith.truncf %230 : vector<8x32xf32> to vector<8x32xbf16>
    %232 = vector.extract_strided_slice %188 {offsets = [16, 0], sizes = [8, 128], strides = [1, 1]} : vector<64x128xf32> to vector<8x128xf32>
    %cst_54 = arith.constant dense<0.000000e+00> : vector<8x128xf32>
    %233 = tpu.matmul %231, %184, %cst_54 {dimension_numbers = #tpu.dot_dimension_numbers<[1], [0], [0], [1], [0, 0, 1, 1], [], []>} : vector<8x32xbf16>, vector<32x128xbf16>, vector<8x128xf32> -> vector<8x128xf32>
    %234 = arith.addf %232, %233 : vector<8x128xf32>
    %235 = arith.negf %234 : vector<8x128xf32>
    %236 = math.exp %235 : vector<8x128xf32>
    %cst_55 = arith.constant 1.000000e+00 : f32
    %237 = vector.broadcast %cst_55 : f32 to vector<8x128xf32>
    %238 = arith.addf %237, %236 : vector<8x128xf32>
    %239 = arith.divf %237, %238 : vector<8x128xf32>
    %240 = vector.extract_strided_slice %239 {offsets = [0, 0], sizes = [8, 32], strides = [1, 1]} : vector<8x128xf32> to vector<8x32xf32>
    %241 = vector.extract_strided_slice %239 {offsets = [0, 32], sizes = [8, 32], strides = [1, 1]} : vector<8x128xf32> to vector<8x32xf32>
    %242 = vector.extract_strided_slice %239 {offsets = [0, 64], sizes = [8, 32], strides = [1, 1]} : vector<8x128xf32> to vector<8x32xf32>
    %cst_56 = arith.constant 2.000000e+00 : f32
    %243 = vector.broadcast %cst_56 : f32 to vector<8x32xf32>
    %244 = arith.mulf %242, %243 : vector<8x32xf32>
    %cst_57 = arith.constant 1.000000e+00 : f32
    %245 = vector.broadcast %cst_57 : f32 to vector<8x32xf32>
    %246 = arith.subf %244, %245 : vector<8x32xf32>
    %247 = vector.extract_strided_slice %239 {offsets = [0, 96], sizes = [8, 32], strides = [1, 1]} : vector<8x128xf32> to vector<8x32xf32>
    %248 = arith.mulf %241, %228 : vector<8x32xf32>
    %249 = arith.mulf %240, %246 : vector<8x32xf32>
    %250 = arith.addf %248, %249 : vector<8x32xf32>
    %251 = math.tanh %250 : vector<8x32xf32>
    %252 = arith.mulf %247, %251 : vector<8x32xf32>
    %253 = arith.truncf %252 : vector<8x32xf32> to vector<8x32xbf16>
    %254 = vector.extract_strided_slice %188 {offsets = [24, 0], sizes = [8, 128], strides = [1, 1]} : vector<64x128xf32> to vector<8x128xf32>
    %cst_58 = arith.constant dense<0.000000e+00> : vector<8x128xf32>
    %255 = tpu.matmul %253, %184, %cst_58 {dimension_numbers = #tpu.dot_dimension_numbers<[1], [0], [0], [1], [0, 0, 1, 1], [], []>} : vector<8x32xbf16>, vector<32x128xbf16>, vector<8x128xf32> -> vector<8x128xf32>
    %256 = arith.addf %254, %255 : vector<8x128xf32>
    %257 = arith.negf %256 : vector<8x128xf32>
    %258 = math.exp %257 : vector<8x128xf32>
    %cst_59 = arith.constant 1.000000e+00 : f32
    %259 = vector.broadcast %cst_59 : f32 to vector<8x128xf32>
    %260 = arith.addf %259, %258 : vector<8x128xf32>
    %261 = arith.divf %259, %260 : vector<8x128xf32>
    %262 = vector.extract_strided_slice %261 {offsets = [0, 0], sizes = [8, 32], strides = [1, 1]} : vector<8x128xf32> to vector<8x32xf32>
    %263 = vector.extract_strided_slice %261 {offsets = [0, 32], sizes = [8, 32], strides = [1, 1]} : vector<8x128xf32> to vector<8x32xf32>
    %264 = vector.extract_strided_slice %261 {offsets = [0, 64], sizes = [8, 32], strides = [1, 1]} : vector<8x128xf32> to vector<8x32xf32>
    %cst_60 = arith.constant 2.000000e+00 : f32
    %265 = vector.broadcast %cst_60 : f32 to vector<8x32xf32>
    %266 = arith.mulf %264, %265 : vector<8x32xf32>
    %cst_61 = arith.constant 1.000000e+00 : f32
    %267 = vector.broadcast %cst_61 : f32 to vector<8x32xf32>
    %268 = arith.subf %266, %267 : vector<8x32xf32>
    %269 = vector.extract_strided_slice %261 {offsets = [0, 96], sizes = [8, 32], strides = [1, 1]} : vector<8x128xf32> to vector<8x32xf32>
    %270 = arith.mulf %263, %250 : vector<8x32xf32>
    %271 = arith.mulf %262, %268 : vector<8x32xf32>
    %272 = arith.addf %270, %271 : vector<8x32xf32>
    %273 = math.tanh %272 : vector<8x32xf32>
    %274 = arith.mulf %269, %273 : vector<8x32xf32>
    %275 = arith.truncf %274 : vector<8x32xf32> to vector<8x32xbf16>
    %276 = vector.extract_strided_slice %188 {offsets = [32, 0], sizes = [8, 128], strides = [1, 1]} : vector<64x128xf32> to vector<8x128xf32>
    %cst_62 = arith.constant dense<0.000000e+00> : vector<8x128xf32>
    %277 = tpu.matmul %275, %184, %cst_62 {dimension_numbers = #tpu.dot_dimension_numbers<[1], [0], [0], [1], [0, 0, 1, 1], [], []>} : vector<8x32xbf16>, vector<32x128xbf16>, vector<8x128xf32> -> vector<8x128xf32>
    %278 = arith.addf %276, %277 : vector<8x128xf32>
    %279 = arith.negf %278 : vector<8x128xf32>
    %280 = math.exp %279 : vector<8x128xf32>
    %cst_63 = arith.constant 1.000000e+00 : f32
    %281 = vector.broadcast %cst_63 : f32 to vector<8x128xf32>
    %282 = arith.addf %281, %280 : vector<8x128xf32>
    %283 = arith.divf %281, %282 : vector<8x128xf32>
    %284 = vector.extract_strided_slice %283 {offsets = [0, 0], sizes = [8, 32], strides = [1, 1]} : vector<8x128xf32> to vector<8x32xf32>
    %285 = vector.extract_strided_slice %283 {offsets = [0, 32], sizes = [8, 32], strides = [1, 1]} : vector<8x128xf32> to vector<8x32xf32>
    %286 = vector.extract_strided_slice %283 {offsets = [0, 64], sizes = [8, 32], strides = [1, 1]} : vector<8x128xf32> to vector<8x32xf32>
    %cst_64 = arith.constant 2.000000e+00 : f32
    %287 = vector.broadcast %cst_64 : f32 to vector<8x32xf32>
    %288 = arith.mulf %286, %287 : vector<8x32xf32>
    %cst_65 = arith.constant 1.000000e+00 : f32
    %289 = vector.broadcast %cst_65 : f32 to vector<8x32xf32>
    %290 = arith.subf %288, %289 : vector<8x32xf32>
    %291 = vector.extract_strided_slice %283 {offsets = [0, 96], sizes = [8, 32], strides = [1, 1]} : vector<8x128xf32> to vector<8x32xf32>
    %292 = arith.mulf %285, %272 : vector<8x32xf32>
    %293 = arith.mulf %284, %290 : vector<8x32xf32>
    %294 = arith.addf %292, %293 : vector<8x32xf32>
    %295 = math.tanh %294 : vector<8x32xf32>
    %296 = arith.mulf %291, %295 : vector<8x32xf32>
    %297 = arith.truncf %296 : vector<8x32xf32> to vector<8x32xbf16>
    %298 = vector.extract_strided_slice %188 {offsets = [40, 0], sizes = [8, 128], strides = [1, 1]} : vector<64x128xf32> to vector<8x128xf32>
    %cst_66 = arith.constant dense<0.000000e+00> : vector<8x128xf32>
    %299 = tpu.matmul %297, %184, %cst_66 {dimension_numbers = #tpu.dot_dimension_numbers<[1], [0], [0], [1], [0, 0, 1, 1], [], []>} : vector<8x32xbf16>, vector<32x128xbf16>, vector<8x128xf32> -> vector<8x128xf32>
    %300 = arith.addf %298, %299 : vector<8x128xf32>
    %301 = arith.negf %300 : vector<8x128xf32>
    %302 = math.exp %301 : vector<8x128xf32>
    %cst_67 = arith.constant 1.000000e+00 : f32
    %303 = vector.broadcast %cst_67 : f32 to vector<8x128xf32>
    %304 = arith.addf %303, %302 : vector<8x128xf32>
    %305 = arith.divf %303, %304 : vector<8x128xf32>
    %306 = vector.extract_strided_slice %305 {offsets = [0, 0], sizes = [8, 32], strides = [1, 1]} : vector<8x128xf32> to vector<8x32xf32>
    %307 = vector.extract_strided_slice %305 {offsets = [0, 32], sizes = [8, 32], strides = [1, 1]} : vector<8x128xf32> to vector<8x32xf32>
    %308 = vector.extract_strided_slice %305 {offsets = [0, 64], sizes = [8, 32], strides = [1, 1]} : vector<8x128xf32> to vector<8x32xf32>
    %cst_68 = arith.constant 2.000000e+00 : f32
    %309 = vector.broadcast %cst_68 : f32 to vector<8x32xf32>
    %310 = arith.mulf %308, %309 : vector<8x32xf32>
    %cst_69 = arith.constant 1.000000e+00 : f32
    %311 = vector.broadcast %cst_69 : f32 to vector<8x32xf32>
    %312 = arith.subf %310, %311 : vector<8x32xf32>
    %313 = vector.extract_strided_slice %305 {offsets = [0, 96], sizes = [8, 32], strides = [1, 1]} : vector<8x128xf32> to vector<8x32xf32>
    %314 = arith.mulf %307, %294 : vector<8x32xf32>
    %315 = arith.mulf %306, %312 : vector<8x32xf32>
    %316 = arith.addf %314, %315 : vector<8x32xf32>
    %317 = math.tanh %316 : vector<8x32xf32>
    %318 = arith.mulf %313, %317 : vector<8x32xf32>
    %319 = arith.truncf %318 : vector<8x32xf32> to vector<8x32xbf16>
    %320 = vector.extract_strided_slice %188 {offsets = [48, 0], sizes = [8, 128], strides = [1, 1]} : vector<64x128xf32> to vector<8x128xf32>
    %cst_70 = arith.constant dense<0.000000e+00> : vector<8x128xf32>
    %321 = tpu.matmul %319, %184, %cst_70 {dimension_numbers = #tpu.dot_dimension_numbers<[1], [0], [0], [1], [0, 0, 1, 1], [], []>} : vector<8x32xbf16>, vector<32x128xbf16>, vector<8x128xf32> -> vector<8x128xf32>
    %322 = arith.addf %320, %321 : vector<8x128xf32>
    %323 = arith.negf %322 : vector<8x128xf32>
    %324 = math.exp %323 : vector<8x128xf32>
    %cst_71 = arith.constant 1.000000e+00 : f32
    %325 = vector.broadcast %cst_71 : f32 to vector<8x128xf32>
    %326 = arith.addf %325, %324 : vector<8x128xf32>
    %327 = arith.divf %325, %326 : vector<8x128xf32>
    %328 = vector.extract_strided_slice %327 {offsets = [0, 0], sizes = [8, 32], strides = [1, 1]} : vector<8x128xf32> to vector<8x32xf32>
    %329 = vector.extract_strided_slice %327 {offsets = [0, 32], sizes = [8, 32], strides = [1, 1]} : vector<8x128xf32> to vector<8x32xf32>
    %330 = vector.extract_strided_slice %327 {offsets = [0, 64], sizes = [8, 32], strides = [1, 1]} : vector<8x128xf32> to vector<8x32xf32>
    %cst_72 = arith.constant 2.000000e+00 : f32
    %331 = vector.broadcast %cst_72 : f32 to vector<8x32xf32>
    %332 = arith.mulf %330, %331 : vector<8x32xf32>
    %cst_73 = arith.constant 1.000000e+00 : f32
    %333 = vector.broadcast %cst_73 : f32 to vector<8x32xf32>
    %334 = arith.subf %332, %333 : vector<8x32xf32>
    %335 = vector.extract_strided_slice %327 {offsets = [0, 96], sizes = [8, 32], strides = [1, 1]} : vector<8x128xf32> to vector<8x32xf32>
    %336 = arith.mulf %329, %316 : vector<8x32xf32>
    %337 = arith.mulf %328, %334 : vector<8x32xf32>
    %338 = arith.addf %336, %337 : vector<8x32xf32>
    %339 = math.tanh %338 : vector<8x32xf32>
    %340 = arith.mulf %335, %339 : vector<8x32xf32>
    %341 = arith.truncf %340 : vector<8x32xf32> to vector<8x32xbf16>
    %342 = vector.extract_strided_slice %188 {offsets = [56, 0], sizes = [8, 128], strides = [1, 1]} : vector<64x128xf32> to vector<8x128xf32>
    %cst_74 = arith.constant dense<0.000000e+00> : vector<8x128xf32>
    %343 = tpu.matmul %341, %184, %cst_74 {dimension_numbers = #tpu.dot_dimension_numbers<[1], [0], [0], [1], [0, 0, 1, 1], [], []>} : vector<8x32xbf16>, vector<32x128xbf16>, vector<8x128xf32> -> vector<8x128xf32>
    %344 = arith.addf %342, %343 : vector<8x128xf32>
    %345 = arith.negf %344 : vector<8x128xf32>
    %346 = math.exp %345 : vector<8x128xf32>
    %cst_75 = arith.constant 1.000000e+00 : f32
    %347 = vector.broadcast %cst_75 : f32 to vector<8x128xf32>
    %348 = arith.addf %347, %346 : vector<8x128xf32>
    %349 = arith.divf %347, %348 : vector<8x128xf32>
    %350 = vector.extract_strided_slice %349 {offsets = [0, 0], sizes = [8, 32], strides = [1, 1]} : vector<8x128xf32> to vector<8x32xf32>
    %351 = vector.extract_strided_slice %349 {offsets = [0, 32], sizes = [8, 32], strides = [1, 1]} : vector<8x128xf32> to vector<8x32xf32>
    %352 = vector.extract_strided_slice %349 {offsets = [0, 64], sizes = [8, 32], strides = [1, 1]} : vector<8x128xf32> to vector<8x32xf32>
    %cst_76 = arith.constant 2.000000e+00 : f32
    %353 = vector.broadcast %cst_76 : f32 to vector<8x32xf32>
    %354 = arith.mulf %352, %353 : vector<8x32xf32>
    %cst_77 = arith.constant 1.000000e+00 : f32
    %355 = vector.broadcast %cst_77 : f32 to vector<8x32xf32>
    %356 = arith.subf %354, %355 : vector<8x32xf32>
    %357 = vector.extract_strided_slice %349 {offsets = [0, 96], sizes = [8, 32], strides = [1, 1]} : vector<8x128xf32> to vector<8x32xf32>
    %358 = arith.mulf %351, %338 : vector<8x32xf32>
    %359 = arith.mulf %350, %356 : vector<8x32xf32>
    %360 = arith.addf %358, %359 : vector<8x32xf32>
    %361 = math.tanh %360 : vector<8x32xf32>
    %362 = arith.mulf %357, %361 : vector<8x32xf32>
    %363 = arith.truncf %362 : vector<8x32xf32> to vector<8x32xbf16>
    %c0_78 = arith.constant 0 : index
    %c0_79 = arith.constant 0 : index
    %364 = vector.load %arg7[%c0_78, %c0_79] : memref<32x128xbf16, #tpu.memory_space<vmem>>, vector<32x128xbf16>
    %cst_80 = arith.constant dense<0.000000e+00> : vector<8x128xf32>
    %365 = tpu.matmul %363, %364, %cst_80 {dimension_numbers = #tpu.dot_dimension_numbers<[1], [0], [0], [1], [0, 0, 1, 1], [], []>} : vector<8x32xbf16>, vector<32x128xbf16>, vector<8x128xf32> -> vector<8x128xf32>
    %c0_81 = arith.constant 0 : index
    %c0_82 = arith.constant 0 : index
    %366 = vector.load %arg8[%c0_81, %c0_82] : memref<1x128xf32, #tpu.memory_space<vmem>>, vector<1x128xf32>
    %367 = vector.broadcast %366 : vector<1x128xf32> to vector<8x128xf32>
    %368 = arith.addf %365, %367 : vector<8x128xf32>
    %c0_83 = arith.constant 0 : index
    %c0_84 = arith.constant 0 : index
    %369 = vector.load %arg9[%c0_83, %c0_84] : memref<8x128xf32, #tpu.memory_space<vmem>>, vector<8x128xf32>
    tpu.vector_store %arg9[%c0_83, %c0_84], %368 {strides = array<i32>} : memref<8x128xf32, #tpu.memory_space<vmem>>, vector<8x128xf32>,
    return
  }
}

</mosaic_0001>

<bundles_post_ra>
// kernel: tpu_custom_call.1
= control target key start
LH: loop header
LB: loop body
LE: loop exit
PB: predicated region body
PF: predicated region fallthrough
CT: control target
= control target key end

     0   :  { %14 = vsyncpa [#allocation3], 0  ;;  %s2367_s0 = inlined_call_operand.vmem [shape: bf16[64,4], index: 0, kind: input, shape index: {}]   ;;  %s2368_s1 = inlined_call_operand.hbm [shape: bf16[4,128], index: 1, kind: input, shape index: {}]   ;;  %s2369_s2 = inlined_call_operand.vmem [shape: bf16[32,128], index: 2, kind: input, shape index: {}]   ;;  %s2370_s3 = inlined_call_operand.vmem [shape: f32[1,128], index: 3, kind: input, shape index: {}]   ;;  %s2371_s4 = inlined_call_operand.vmem [shape: bf16[32,128], index: 4, kind: input, shape index: {}]   ;;  %s2372_s5 = inlined_call_operand.vmem [shape: bf16[32,128], index: 5, kind: input, shape index: {}]   ;;  %s2373_s6 = inlined_call_operand.vmem [shape: f32[1,128], index: 6, kind: input, shape index: {}]   ;;  %s2374_s7 = inlined_call_operand.hbm [shape: bf16[32,128], index: 7, kind: input, shape index: {}]   ;;  %s2375_s8 = inlined_call_operand.vmem [shape: f32[1,128], index: 8, kind: input, shape index: {}]   ;;  %s2376_s9 = inlined_call_operand.hbm [shape: f32[8,128], index: 9, kind: output, shape index: {}]  }
   0x1   :  { %15 = vsyncpa [#allocation6], 0 }
   0x2   :  { %16 = vsyncpa [#allocation4], 0  ;;  %s1943_s30 = smov [#allocation2]   ;;  %s1944_s11 = smov [#allocation5]  }
   0x3   :  { %s25_s10 = sshll.u32 %s1943_s30, 4  ;;  %s44_s12 = sshll.u32 %s1944_s11, 4  ;;  %s26_s10 = int_to_ptr.vmem [resolvable:$true] %s25_s10  ;;  %s2001_s12 = int_to_ptr.vmem [resolvable:$true] %s44_s12 }
   0x4   :  { %s1871_s15 = scalar_lea.hbm %s2368_s1, 32 }
   0x5   :  { %p1872_p0 = scmp.ne.s32.totalorder %s2368_s1, %s1871_s15  ;;  %p1875_p1 = scmp.lt.u32.totalorder %s1871_s15, %s2368_s1 }
   0x7   :  { %p1877_p2 = pnand %p1875_p1, %p1872_p0 }
   0x9   :  { %1880 = shalt.err (!%p1877_p2)
}
   0xa   :  { %s1881_s20 = scalar_lea.vmem %s26_s10, 32  ;;  %p1886_p4 = scmp.lt.s32.totalorder %s26_s10, %s26_s10 }
   0xb   :  { %p1882_p3 = scmp.ne.s32.totalorder %s26_s10, %s1881_s20  ;;  %p1887_p5 = scmp.lt.s32.totalorder %s1881_s20, %s1881_s20 }
   0xd   :  { %p1888_p6 = por %p1887_p5, %p1886_p4 }
   0xf   :  { %p1889_p7 = pnand %p1888_p6, %p1882_p3 }
  0x11   :  { %1892 = shalt.err (!%p1889_p7)
}
  0x12   :  { %28 = dma.hbm_to_vmem [thread:$0]  %s2368_s1, 32, %s26_s10, [#allocation3]  }
  0x13   :  { %s1893_s25 = scalar_lea.hbm %s2374_s7, 256 }
  0x14   :  { %p1894_p8 = scmp.ne.s32.totalorder %s2374_s7, %s1893_s25  ;;  %p1897_p9 = scmp.lt.u32.totalorder %s1893_s25, %s2374_s7 }
  0x16   :  { %p1899_p10 = pnand %p1897_p9, %p1894_p8 }
  0x18   :  { %1902 = shalt.err (!%p1899_p10)
}
  0x19   :  { %s1903_s30 = scalar_lea.vmem %s2001_s12, 256  ;;  %p1908_p12 = scmp.lt.s32.totalorder %s2001_s12, %s2001_s12 }
  0x1a   :  { %p1904_p11 = scmp.ne.s32.totalorder %s2001_s12, %s1903_s30  ;;  %p1909_p13 = scmp.lt.s32.totalorder %s1903_s30, %s1903_s30 }
  0x1c   :  { %p1910_p0 = por %p1909_p13, %p1908_p12 }
  0x1e   :  { %p1911_p1 = pnand %p1910_p0, %p1904_p11 }
  0x20   :  { %1914 = shalt.err (!%p1911_p1)
}
  0x21   :  { %s1945_s1 = smov 64   ;;  %s1946_s10 = smov 4  }
  0x22   :  { %50 = dma.hbm_to_vmem [thread:$0]  %s2374_s7, 256, %s2001_s12, [#allocation6], %s1945_s1, %s1945_s1, %s1946_s10  }
  0x23   :  { %1937 = dma.done.wait [#allocation3], 32  }
  0x24   :  { %1938 = vsyncadd [#allocation3], 4294967264 }
  0x25   :  { %1939 = dma.done.wait [#allocation6], 256  }
  0x26   :  { %1940 = vsyncadd [#allocation6], 4294967040  ;;  %vm113_vm0 = vcmask 1041408   ;;  %vm100_vm1 = vcmask 31744   ;;  %v68_v0 = vld [vmem:[#allocation2] sm:$0x3] }
  0x27   :  { %1754 = vmatprep.subr.msk.bf16.mxu0 %vm113_vm0, %v68_v0  ;;  %v115_v1 = vsel %vm113_vm0, %v68_v0, 0  ;;  %v1763_v2 = vld [vmem:[%s2367_s0] sm:$0xff]   ;;  %v1764_v3 = vld [vmem:[%s2367_s0 + $0x8] sm:$0xff]   ;;  %v1948_v22 = vmov 0.0   ;;  %vm1949_vm2 = vmmov 0   ;;  %vm223_vm3 = vcmask 261120  }
  0x28   :  { %1613 = vmatpush3.bf16.msra.mxu0 %v115_v1  ;;  %1614 = vmatprep.mubr.msk.bf16.mxu0 %vm100_vm1, %v1763_v2  ;;  %v2045_v4 = vld [vmem:[%s2370_s3] ss:$0 sm:$0xff]  ;;  %s1947_s3 = smov 32   ;;  %v2066_v23 = vld [vmem:[%s2369_s2 + $0x8] sm:$0xff]   ;;  %s1950_s13 = smov [#allocation7]  }
  0x29   :  { %v2057_v21 = vld [vmem:[%s2369_s2] sm:$0xff]   ;;  %1622 = vmatprep.subr.bf16.mxu1 %v1948_v22  ;;  %1626 = vmatprep.mubr.msk.bf16.mxu1 %vm1949_vm2, %v1948_v22  ;;  %s1476_s14 = sshll.u32 %s1950_s13, 4  ;;  %s1477_s14 = int_to_ptr.vmem [resolvable:$true] %s1476_s14 }
  0x2a   :  { %1623 = vmatpush3.bf16.msra.mxu1 %v2057_v21  ;;  %1638 = vmatprep.subr.bf16.mxu0 %v1948_v22  ;;  %p1920_p3 = scmp.lt.s32.totalorder %s1477_s14, %s1477_s14 }
  0x2b   :  { %1615 = vmatmul.mubr.msk.bf16.vlgmr.msra.gmra.mrb[0].mxu0 %vm100_vm1, %v1764_v3  ;;  %1624 = vmatprep.subr.bf16.mxu1 %v1948_v22 }
  0x2c   :  { %1639 = vmatpush3.bf16.msra.mxu0 %v2057_v21 }
  0x2d   :  { %1640 = vmatprep.subr.bf16.mxu0 %v1948_v22 }
  0x2e   :  { %1625 = vmatpush3.bf16.msra.mxu1 %v2066_v23 }
  0x2f   :  { %1630 = vmatprep.subr.bf16.mxu1 %v1948_v22 }
  0x30   :  { %1641 = vmatpush3.bf16.msra.mxu0 %v2066_v23 }
  0x31   :  { %1654 = vmatprep.subr.bf16.mxu0 %v1948_v22 }
  0xfe   :  { %v2047_v5 = vpop.f32.mrb[0].mxu0 }
  0xff   :  { %v151_v6 = vpop.f32.mrb[1].mxu0  ;;  %v160_v51 = vadd.f32 %v2047_v5, %v2045_v4  ;;  %v1767_v5 = vld [vmem:[%s2367_s0 + $0x10] sm:$0xff]  }
 0x100   :  { %v152_v7 = vadd.f32 %v2045_v4, %v151_v6  ;;  %v2050_v8 = vpop.f32.mrb[2].mxu0  ;;  %v1768_v6 = vld [vmem:[%s2367_s0 + $0x18] sm:$0xff]   ;;  %1618 = vmatprep.mubr.msk.bf16.mxu0 %vm100_vm1, %v1767_v5 }
 0x101   :  { %v154_v9 = vpop.f32.mrb[3].mxu0  ;;  %1619 = vmatmul.mubr.msk.bf16.gmra.mrb[4].mxu0 %vm100_vm1, %v1768_v6 }
 0x102   :  { %v1495_v10 = vmul.f32 -1.442695, %v152_v7  ;;  %v155_v29 = vadd.f32 %v2045_v4, %v154_v9  ;;  %1642 = vmatprep.mubr.msk.bf16.mxu0 %vm1949_vm2, %v1948_v22 }
 0x104   :  { %1775 = vpow2.f32 %v1495_v10 }
 0x10e   :  { %v1776_v11 = vpop.eup %1775 }
 0x10f   :  { %v185_v12 = vadd.f32 1.0, %v1776_v11 }
 0x111   :  { %1777 = vrcp.f32 %v185_v12 }
 0x11b   :  { %v1778_v13 = vpop.eup %1777 }
 0x11c   :  { %v188_v14 = vmul.f32 2.0, %v1778_v13  ;;  %v190_v18 = vmul.f32 0.0, %v1778_v13 }
 0x11e   :  { %v1496_v15 = vadd.f32 -1.0, %v188_v14 }
 0x120   :  { %192 = vrot.lane.b32.xlu0 %v1496_v15, %s1945_s1 }
 0x192   :  { %v193_v16 = vpop.permute.xlu0 %192 }
 0x193   :  { %v195_v17 = vmul.f32 %v1778_v13, %v193_v16 }
 0x195   :  { %197 = vrot.lane.b32.xlu0 %v195_v17, %s1947_s3  ;;  %v163_v17 = vadd.f32 %v2050_v8, %v2045_v4 }
 0x1d4   :  { %v2125_v12 = vpop.f32.mrb[4].mxu0 }
 0x207   :  { %v198_v19 = vpop.permute.xlu0 %197 }
 0x208   :  { %v200_v20 = vadd.f32 %v198_v19, %v190_v18 }
 0x20a   :  { %1779 = vtanh.f32 %v200_v20 }
 0x214   :  { %v1780_v24 = vpop.eup %1779 }
 0x215   :  { %203 = vrot.lane.b32.xlu1 %v1780_v24, %s1945_s1 }
 0x287   :  { %v204_v25 = vpop.permute.xlu1 %203 }
 0x288   :  { %v2077_v26 = vmul.f32 %v1778_v13, %v204_v25  ;;  %v167_v13 = vpop.f32.mrb[5].mxu0 }
 0x289   :  { %v2127_v14 = vpop.f32.mrb[6].mxu0 }
 0x28a   :  { %v207_v27 = vpack.c.bf16 %v2077_v26, %v2077_v26  ;;  %v2129_v15 = vpop.f32.mrb[7].mxu0 }
 0x28c   :  { %209 = vrot.lane.b32.xlu1 %v207_v27, %s1947_s3 }
 0x2fe   :  { %v210_v28 = vpop.permute.xlu1 %209 }
 0x2ff   :  { %1627 = vmatmul.mubr.msk.bf16.vlgmr.msra.gmra.mrb[0].mxu1 %vm223_vm3, %v210_v28 }
 0x300   :  { %1631 = vmatpush3.bf16.msra.mxu1 %v2057_v21  ;;  %1634 = vmatprep.mubr.msk.bf16.mxu1 %vm1949_vm2, %v1948_v22 }
 0x301   :  { %1632 = vmatprep.subr.bf16.mxu1 %v1948_v22 }
 0x304   :  { %1633 = vmatpush3.bf16.msra.mxu1 %v2066_v23 }
 0x305   :  { %1646 = vmatprep.subr.bf16.mxu1 %v1948_v22 }
 0x3d2   :  { %v261_v30 = vpop.f32.mrb[0].mxu1 }
 0x3d3   :  { %v267_v31 = vadd.f32 %v261_v30, %v155_v29  ;;  %v1628_v32 = vpop.f32.mrb[1].mxu1 }
 0x3d4   :  { %v264_v33 = vpop.f32.mrb[2].mxu1 }
 0x3d5   :  { %v1500_v34 = vmul.f32 -1.442695, %v267_v31  ;;  %v1629_v35 = vpop.f32.mrb[3].mxu1 }
 0x3d7   :  { %1781 = vpow2.f32 %v1500_v34 }
 0x3e1   :  { %v1782_v36 = vpop.eup %1781 }
 0x3e2   :  { %v271_v37 = vadd.f32 1.0, %v1782_v36 }
 0x3e4   :  { %1783 = vrcp.f32 %v271_v37 }
 0x3ee   :  { %v1784_v38 = vpop.eup %1783 }
 0x3ef   :  { %v274_v39 = vmul.f32 2.0, %v1784_v38  ;;  %v276_v43 = vmul.f32 %v1784_v38, %v200_v20 }
 0x3f1   :  { %v1501_v40 = vadd.f32 -1.0, %v274_v39 }
 0x3f3   :  { %278 = vrot.lane.b32.xlu0 %v1501_v40, %s1945_s1 }
 0x465   :  { %v279_v41 = vpop.permute.xlu0 %278 }
 0x466   :  { %v281_v42 = vmul.f32 %v1784_v38, %v279_v41 }
 0x468   :  { %283 = vrot.lane.b32.xlu1 %v281_v42, %s1947_s3  ;;  %v168_v42 = vadd.f32 %v2045_v4, %v167_v13 }
 0x4da   :  { %v284_v44 = vpop.permute.xlu1 %283 }
 0x4db   :  { %v286_v45 = vadd.f32 %v284_v44, %v276_v43 }
 0x4dd   :  { %1785 = vtanh.f32 %v286_v45 }
 0x4e7   :  { %v1786_v46 = vpop.eup %1785 }
 0x4e8   :  { %289 = vrot.lane.b32.xlu0 %v1786_v46, %s1945_s1 }
 0x55a   :  { %v290_v47 = vpop.permute.xlu0 %289 }
 0x55b   :  { %v2093_v48 = vmul.f32 %v1784_v38, %v290_v47 }
 0x55d   :  { %v293_v49 = vpack.c.bf16 %v2093_v48, %v2093_v48 }
 0x55f   :  { %295 = vrot.lane.b32.xlu1 %v293_v49, %s1947_s3 }
 0x5d1   :  { %v296_v50 = vpop.permute.xlu1 %295 }
 0x5d2   :  { %1635 = vmatmul.mubr.msk.bf16.vlgmr.msra.gmra.mrb[4].mxu1 %vm223_vm3, %v296_v50 }
 0x5d3   :  { %1647 = vmatpush3.bf16.msra.mxu1 %v2057_v21  ;;  %1650 = vmatprep.mubr.msk.bf16.mxu1 %vm1949_vm2, %v1948_v22 }
 0x5d4   :  { %1648 = vmatprep.subr.bf16.mxu1 %v1948_v22 }
 0x5d7   :  { %1649 = vmatpush3.bf16.msra.mxu1 %v2066_v23 }
 0x5d8   :  { %1662 = vmatprep.subr.bf16.mxu1 %v1948_v22 }
 0x6a5   :  { %v334_v52 = vpop.f32.mrb[4].mxu1 }
 0x6a6   :  { %v340_v53 = vadd.f32 %v334_v52, %v160_v51  ;;  %v1636_v54 = vpop.f32.mrb[5].mxu1 }
 0x6a7   :  { %v337_v55 = vpop.f32.mrb[6].mxu1 }
 0x6a8   :  { %v1503_v56 = vmul.f32 -1.442695, %v340_v53  ;;  %v1637_v57 = vpop.f32.mrb[7].mxu1 }
 0x6aa   :  { %1787 = vpow2.f32 %v1503_v56 }
 0x6b4   :  { %v1788_v58 = vpop.eup %1787 }
 0x6b5   :  { %v344_v59 = vadd.f32 1.0, %v1788_v58 }
 0x6b7   :  { %1789 = vrcp.f32 %v344_v59 }
 0x6c1   :  { %v1790_v60 = vpop.eup %1789 }
 0x6c2   :  { %v347_v61 = vmul.f32 2.0, %v1790_v60  ;;  %v349_v1 = vmul.f32 %v1790_v60, %v286_v45 }
 0x6c4   :  { %v1504_v62 = vadd.f32 -1.0, %v347_v61 }
 0x6c6   :  { %351 = vrot.lane.b32.xlu0 %v1504_v62, %s1945_s1 }
 0x738   :  { %v352_v63 = vpop.permute.xlu0 %351 }
 0x739   :  { %v354_v0 = vmul.f32 %v1790_v60, %v352_v63 }
 0x73b   :  { %356 = vrot.lane.b32.xlu1 %v354_v0, %s1947_s3 }
 0x7ad   :  { %v357_v2 = vpop.permute.xlu1 %356 }
 0x7ae   :  { %v359_v3 = vadd.f32 %v357_v2, %v349_v1  ;;  %v171_v1 = vadd.f32 %v2045_v4, %v2129_v15 }
 0x7b0   :  { %1791 = vtanh.f32 %v359_v3 }
 0x7ba   :  { %v1792_v7 = vpop.eup %1791 }
 0x7bb   :  { %362 = vrot.lane.b32.xlu0 %v1792_v7, %s1945_s1 }
 0x82d   :  { %v363_v9 = vpop.permute.xlu0 %362 }
 0x82e   :  { %v2120_v10 = vmul.f32 %v1790_v60, %v363_v9 }
 0x830   :  { %v366_v11 = vpack.c.bf16 %v2120_v10, %v2120_v10 }
 0x832   :  { %368 = vrot.lane.b32.xlu1 %v366_v11, %s1947_s3 }
 0x8a4   :  { %v369_v16 = vpop.permute.xlu1 %368 }
 0x8a5   :  { %1643 = vmatmul.mubr.msk.bf16.vlgmr.msra.gmra.mrb[8].mxu0 %vm223_vm3, %v369_v16 }
 0x8a6   :  { %1655 = vmatpush3.bf16.msra.mxu0 %v2057_v21  ;;  %1658 = vmatprep.mubr.msk.bf16.mxu0 %vm1949_vm2, %v1948_v22 }
 0x8a7   :  { %1656 = vmatprep.subr.bf16.mxu0 %v1948_v22 }
 0x8aa   :  { %1657 = vmatpush3.bf16.msra.mxu0 %v2066_v23 }
 0x8ab   :  { %1670 = vmatprep.subr.bf16.mxu0 %v1948_v22 }
 0x978   :  { %v407_v18 = vpop.f32.mrb[8].mxu0 }
 0x979   :  { %v413_v19 = vadd.f32 %v407_v18, %v163_v17  ;;  %v1644_v20 = vpop.f32.mrb[9].mxu0 }
 0x97a   :  { %v410_v24 = vpop.f32.mrb[10].mxu0 }
 0x97b   :  { %v1506_v25 = vmul.f32 -1.442695, %v413_v19  ;;  %v1645_v27 = vpop.f32.mrb[11].mxu0  ;;  %v1769_v24 = vld [vmem:[%s2371_s4] sm:$0xff]  }
 0x97c   :  { %v731_v27 = vpack.c.bf16 %v2093_v48, %v2077_v26 }
 0x97d   :  { %1793 = vpow2.f32 %v1506_v25 }
 0x987   :  { %v1794_v28 = vpop.eup %1793 }
 0x988   :  { %v417_v29 = vadd.f32 1.0, %v1794_v28 }
 0x98a   :  { %1795 = vrcp.f32 %v417_v29 }
 0x994   :  { %v1796_v30 = vpop.eup %1795 }
 0x995   :  { %v420_v31 = vmul.f32 2.0, %v1796_v30  ;;  %v422_v8 = vmul.f32 %v1796_v30, %v359_v3 }
 0x997   :  { %v1507_v32 = vadd.f32 -1.0, %v420_v31 }
 0x999   :  { %424 = vrot.lane.b32.xlu0 %v1507_v32, %s1945_s1  ;;  %v1770_v32 = vld [vmem:[%s2371_s4 + $0x8] sm:$0xff]  }
 0xa0b   :  { %v425_v33 = vpop.permute.xlu0 %424 }
 0xa0c   :  { %v427_v34 = vmul.f32 %v1796_v30, %v425_v33 }
 0xa0e   :  { %429 = vrot.lane.b32.xlu1 %v427_v34, %s1947_s3 }
 0xa80   :  { %v430_v35 = vpop.permute.xlu1 %429 }
 0xa81   :  { %v432_v36 = vadd.f32 %v430_v35, %v422_v8 }
 0xa83   :  { %1797 = vtanh.f32 %v432_v36 }
 0xa8d   :  { %v1798_v37 = vpop.eup %1797 }
 0xa8e   :  { %435 = vrot.lane.b32.xlu0 %v1798_v37, %s1945_s1 }
 0xb00   :  { %v436_v38 = vpop.permute.xlu0 %435 }
 0xb01   :  { %v2143_v39 = vmul.f32 %v1796_v30, %v436_v38 }
 0xb03   :  { %v439_v40 = vpack.c.bf16 %v2143_v39, %v2143_v39  ;;  %v732_v31 = vpack.c.bf16 %v2143_v39, %v2120_v10  ;;  %v176_v10 = vadd.f32 %v2125_v12, %v2045_v4  ;;  %v2201_v39 = vld [vmem:[%s2373_s6] ss:$0 sm:$0xff] }
 0xb05   :  { %441 = vrot.lane.b32.xlu1 %v439_v40, %s1947_s3 }
 0xb77   :  { %v442_v41 = vpop.permute.xlu1 %441 }
 0xb78   :  { %1651 = vmatmul.mubr.msk.bf16.vlgmr.msra.gmra.mrb[8].mxu1 %vm223_vm3, %v442_v41 }
 0xb79   :  { %1663 = vmatpush3.bf16.msra.mxu1 %v2057_v21  ;;  %1666 = vmatprep.mubr.msk.bf16.mxu1 %vm1949_vm2, %v1948_v22 }
 0xb7a   :  { %1664 = vmatprep.subr.bf16.mxu1 %v1948_v22 }
 0xb7d   :  { %1665 = vmatpush3.bf16.msra.mxu1 %v2066_v23 }
 0xb7e   :  { %1678 = vmatprep.subr.bf16.mxu1 %v1769_v24 }
 0xc4b   :  { %v480_v43 = vpop.f32.mrb[8].mxu1 }
 0xc4c   :  { %v486_v44 = vadd.f32 %v480_v43, %v168_v42  ;;  %v1652_v45 = vpop.f32.mrb[9].mxu1 }
 0xc4d   :  { %v483_v46 = vpop.f32.mrb[10].mxu1 }
 0xc4e   :  { %v1509_v47 = vmul.f32 -1.442695, %v486_v44  ;;  %v1653_v49 = vpop.f32.mrb[11].mxu1 }
 0xc50   :  { %1799 = vpow2.f32 %v1509_v47 }
 0xc5a   :  { %v1800_v50 = vpop.eup %1799 }
 0xc5b   :  { %v490_v51 = vadd.f32 1.0, %v1800_v50 }
 0xc5d   :  { %1801 = vrcp.f32 %v490_v51 }
 0xc67   :  { %v1802_v52 = vpop.eup %1801 }
 0xc68   :  { %v493_v53 = vmul.f32 2.0, %v1802_v52  ;;  %v495_v57 = vmul.f32 %v1802_v52, %v432_v36 }
 0xc6a   :  { %v1510_v54 = vadd.f32 -1.0, %v493_v53 }
 0xc6c   :  { %497 = vrot.lane.b32.xlu0 %v1510_v54, %s1945_s1 }
 0xcde   :  { %v498_v55 = vpop.permute.xlu0 %497 }
 0xcdf   :  { %v500_v56 = vmul.f32 %v1802_v52, %v498_v55 }
 0xce1   :  { %502 = vrot.lane.b32.xlu1 %v500_v56, %s1947_s3 }
 0xd53   :  { %v503_v58 = vpop.permute.xlu1 %502 }
 0xd54   :  { %v505_v59 = vadd.f32 %v503_v58, %v495_v57 }
 0xd56   :  { %1803 = vtanh.f32 %v505_v59 }
 0xd60   :  { %v1804_v60 = vpop.eup %1803 }
 0xd61   :  { %508 = vrot.lane.b32.xlu0 %v1804_v60, %s1945_s1 }
 0xdd3   :  { %v509_v61 = vpop.permute.xlu0 %508 }
 0xdd4   :  { %v2158_v62 = vmul.f32 %v1802_v52, %v509_v61 }
 0xdd6   :  { %v512_v63 = vpack.c.bf16 %v2158_v62, %v2158_v62 }
 0xdd8   :  { %514 = vrot.lane.b32.xlu1 %v512_v63, %s1947_s3 }
 0xe4a   :  { %v515_v0 = vpop.permute.xlu1 %514 }
 0xe4b   :  { %1659 = vmatmul.mubr.msk.bf16.vlgmr.msra.gmra.mrb[12].mxu0 %vm223_vm3, %v515_v0 }
 0xe4c   :  { %1671 = vmatpush3.bf16.msra.mxu0 %v2057_v21  ;;  %1674 = vmatprep.mubr.msk.bf16.mxu0 %vm1949_vm2, %v1948_v22 }
 0xe4d   :  { %1672 = vmatprep.subr.bf16.mxu0 %v1948_v22 }
 0xe50   :  { %1673 = vmatpush3.bf16.msra.mxu0 %v2066_v23 }
 0xe51   :  { %1690 = vmatprep.subr.bf16.mxu0 %v1948_v22 }
 0xf1e   :  { %v553_v2 = vpop.f32.mrb[12].mxu0 }
 0xf1f   :  { %v559_v3 = vadd.f32 %v553_v2, %v171_v1  ;;  %v1660_v5 = vpop.f32.mrb[13].mxu0 }
 0xf20   :  { %v556_v6 = vpop.f32.mrb[14].mxu0 }
 0xf21   :  { %v1512_v7 = vmul.f32 -1.442695, %v559_v3  ;;  %v1661_v9 = vpop.f32.mrb[15].mxu0  ;;  %v2225_v6 = vld [vmem:[%s2372_s5] sm:$0xff]  }
 0xf23   :  { %1805 = vpow2.f32 %v1512_v7  ;;  %v2232_v7 = vld [vmem:[%s2372_s5 + $0x8] sm:$0xff]  }
 0xf2d   :  { %v1806_v21 = vpop.eup %1805 }
 0xf2e   :  { %v563_v11 = vadd.f32 1.0, %v1806_v21 }
 0xf30   :  { %1807 = vrcp.f32 %v563_v11 }
 0xf3a   :  { %v1808_v13 = vpop.eup %1807 }
 0xf3b   :  { %v566_v16 = vmul.f32 2.0, %v1808_v13  ;;  %v568_v15 = vmul.f32 %v1808_v13, %v505_v59 }
 0xf3d   :  { %v1513_v17 = vadd.f32 -1.0, %v566_v16 }
 0xf3f   :  { %570 = vrot.lane.b32.xlu0 %v1513_v17, %s1945_s1 }
 0xfb1   :  { %v571_v23 = vpop.permute.xlu0 %570 }
 0xfb2   :  { %v573_v18 = vmul.f32 %v1808_v13, %v571_v23 }
 0xfb4   :  { %575 = vrot.lane.b32.xlu1 %v573_v18, %s1947_s3 }
0x1026   :  { %v576_v19 = vpop.permute.xlu1 %575 }
0x1027   :  { %v578_v20 = vadd.f32 %v576_v19, %v568_v15  ;;  %v179_v15 = vadd.f32 %v2127_v14, %v2045_v4 }
0x1029   :  { %1809 = vtanh.f32 %v578_v20 }
0x1033   :  { %v1810_v25 = vpop.eup %1809 }
0x1034   :  { %581 = vrot.lane.b32.xlu0 %v1810_v25, %s1945_s1 }
0x1038   :  { %754 = vrot.lane.b32.xlu0 %v731_v27, %s1947_s3 }
0x10a6   :  { %v582_v28 = vpop.permute.xlu0 %581 }
0x10a7   :  { %v2181_v29 = vmul.f32 %v1808_v13, %v582_v28 }
0x10a9   :  { %v585_v30 = vpack.c.bf16 %v2181_v29, %v2181_v29 }
0x10aa   :  { %v755_v48 = vpop.permute.xlu0 %754 }
0x10ab   :  { %587 = vrot.lane.b32.xlu1 %v585_v30, %s1947_s3 }
0x10af   :  { %756 = vrot.lane.b32.xlu1 %v732_v31, %s1947_s3 }
0x111d   :  { %v588_v26 = vpop.permute.xlu1 %587 }
0x111e   :  { %1667 = vmatmul.mubr.msk.bf16.vlgmr.msra.gmra.mrb[12].mxu1 %vm223_vm3, %v588_v26 }
0x111f   :  { %1679 = vmatpush3.bf16.msra.mxu1 %v1769_v24  ;;  %1682 = vmatprep.mubr.msk.bf16.mxu1 %vm223_vm3, %v755_v48 }
0x1120   :  { %1680 = vmatprep.subr.bf16.mxu1 %v1770_v32 }
0x1121   :  { %v757_v33 = vpop.permute.xlu1 %756 }
0x1123   :  { %1681 = vmatpush3.bf16.msra.mxu1 %v1770_v32 }
0x1124   :  { %1706 = vmatprep.subr.bf16.mxu1 %v1948_v22 }
0x1126   :  { %1683 = vmatmul.mubr.msk.bf16.vlgmr.msra.gmra.mrb[16].mxu1 %vm223_vm3, %v757_v33 }
0x1127   :  { %1707 = vmatpush3.bf16.msra.mxu1 %v2225_v6 }
0x1128   :  { %1708 = vmatprep.subr.bf16.mxu1 %v1948_v22 }
0x112b   :  { %1709 = vmatpush3.bf16.msra.mxu1 %v2232_v7 }
0x112c   :  { %1722 = vmatprep.subr.bf16.mxu1 %v1948_v22 }
0x11f1   :  { %v626_v34 = vpop.f32.mrb[12].mxu1 }
0x11f2   :  { %v632_v8 = vadd.f32 %v626_v34, %v176_v10  ;;  %v1668_v35 = vpop.f32.mrb[13].mxu1 }
0x11f3   :  { %v629_v36 = vpop.f32.mrb[14].mxu1 }
0x11f4   :  { %v1515_v37 = vmul.f32 -1.442695, %v632_v8  ;;  %v1669_v38 = vpop.f32.mrb[15].mxu1 }
0x11f6   :  { %1811 = vpow2.f32 %v1515_v37 }
0x11f9   :  { %v2203_v40 = vpop.f32.mrb[16].mxu1 }
0x11fa   :  { %v820_v41 = vpop.f32.mrb[17].mxu1 }
0x11fb   :  { %v821_v42 = vadd.f32 %v2201_v39, %v820_v41  ;;  %v2206_v43 = vpop.f32.mrb[18].mxu1 }
0x11fc   :  { %v2208_v12 = vpop.f32.mrb[19].mxu1 }
0x11fd   :  { %v1527_v44 = vmul.f32 -1.442695, %v821_v42  ;;  %v824_v28 = vadd.f32 %v2201_v39, %v2208_v12 }
0x11ff   :  { %1813 = vpow2.f32 %v1527_v44 }
0x1200   :  { %v1812_v45 = vpop.eup %1811 }
0x1201   :  { %v636_v46 = vadd.f32 1.0, %v1812_v45 }
0x1203   :  { %1815 = vrcp.f32 %v636_v46 }
0x1209   :  { %v1814_v47 = vpop.eup %1813 }
0x120a   :  { %v854_v49 = vadd.f32 1.0, %v1814_v47 }
0x120c   :  { %1817 = vrcp.f32 %v854_v49 }
0x120d   :  { %v1816_v50 = vpop.eup %1815 }
0x120e   :  { %v639_v51 = vmul.f32 2.0, %v1816_v50  ;;  %v641_v60 = vmul.f32 %v1816_v50, %v578_v20 }
0x1210   :  { %v1516_v52 = vadd.f32 -1.0, %v639_v51 }
0x1212   :  { %643 = vrot.lane.b32.xlu0 %v1516_v52, %s1945_s1 }
0x1216   :  { %v1818_v53 = vpop.eup %1817 }
0x1217   :  { %v857_v54 = vmul.f32 2.0, %v1818_v53  ;;  %v859_v0 = vmul.f32 0.0, %v1818_v53 }
0x1219   :  { %v1528_v55 = vadd.f32 -1.0, %v857_v54 }
0x121b   :  { %861 = vrot.lane.b32.xlu1 %v1528_v55, %s1945_s1 }
0x1284   :  { %v644_v56 = vpop.permute.xlu0 %643 }
0x1285   :  { %v646_v57 = vmul.f32 %v1816_v50, %v644_v56 }
0x1287   :  { %648 = vrot.lane.b32.xlu0 %v646_v57, %s1947_s3 }
0x128d   :  { %v862_v58 = vpop.permute.xlu1 %861 }
0x128e   :  { %v864_v59 = vmul.f32 %v1818_v53, %v862_v58 }
0x1290   :  { %866 = vrot.lane.b32.xlu1 %v864_v59, %s1947_s3 }
0x12f9   :  { %v649_v61 = vpop.permute.xlu0 %648 }
0x12fa   :  { %v2214_v63 = vadd.f32 %v649_v61, %v641_v60  ;;  %v733_v60 = vpack.c.bf16 %v2181_v29, %v2158_v62 }
0x12fc   :  { %1819 = vtanh.f32 %v2214_v63 }
0x1302   :  { %v867_v1 = vpop.permute.xlu1 %866 }
0x1303   :  { %v2217_v2 = vadd.f32 %v867_v1, %v859_v0  ;;  %v829_v0 = vadd.f32 %v2203_v40, %v2201_v39 }
0x1305   :  { %1821 = vtanh.f32 %v2217_v2 }
0x1306   :  { %v1820_v3 = vpop.eup %1819 }
0x1307   :  { %654 = vrot.lane.b32.xlu0 %v1820_v3, %s1945_s1 }
0x130f   :  { %v1822_v5 = vpop.eup %1821 }
0x1310   :  { %872 = vrot.lane.b32.xlu1 %v1822_v5, %s1945_s1 }
0x1379   :  { %v655_v9 = vpop.permute.xlu0 %654 }
0x137a   :  { %v2236_v21 = vmul.f32 %v1816_v50, %v655_v9 }
0x137c   :  { %v658_v11 = vpack.c.bf16 %v2236_v21, %v2236_v21 }
0x137e   :  { %660 = vrot.lane.b32.xlu0 %v658_v11, %s1947_s3 }
0x1382   :  { %v873_v13 = vpop.permute.xlu1 %872 }
0x1383   :  { %v875_v16 = vmul.f32 %v1818_v53, %v873_v13 }
0x1385   :  { %v876_v17 = vpack.c.bf16 %v875_v16, %v875_v16 }
0x1387   :  { %878 = vrot.lane.b32.xlu1 %v876_v17, %s1947_s3 }
0x13f0   :  { %v661_v23 = vpop.permute.xlu0 %660 }
0x13f1   :  { %1675 = vmatmul.mubr.msk.bf16.vlgmr.msra.gmra.mrb[16].mxu0 %vm223_vm3, %v661_v23 }
0x13f2   :  { %1691 = vmatpush3.bf16.msra.mxu0 %v2225_v6  ;;  %1694 = vmatprep.mubr.msk.bf16.mxu0 %vm1949_vm2, %v1948_v22 }
0x13f3   :  { %1692 = vmatprep.subr.bf16.mxu0 %v1948_v22 }
0x13f6   :  { %1693 = vmatpush3.bf16.msra.mxu0 %v2232_v7 }
0x13f7   :  { %1698 = vmatprep.subr.bf16.mxu0 %v1948_v22 }
0x13f9   :  { %v879_v18 = vpop.permute.xlu1 %878 }
0x13fa   :  { %1695 = vmatmul.mubr.msk.bf16.vlgmr.msra.gmra.mrb[20].mxu0 %vm223_vm3, %v879_v18 }
0x13fb   :  { %1699 = vmatpush3.bf16.msra.mxu0 %v2225_v6  ;;  %1702 = vmatprep.mubr.msk.bf16.mxu0 %vm1949_vm2, %v1948_v22 }
0x13fc   :  { %1700 = vmatprep.subr.bf16.mxu0 %v1948_v22 }
0x13ff   :  { %1701 = vmatpush3.bf16.msra.mxu0 %v2232_v7 }
0x1400   :  { %1714 = vmatprep.subr.bf16.mxu0 %v1948_v22 }
0x14c4   :  { %v699_v19 = vpop.f32.mrb[16].mxu0 }
0x14c5   :  { %v705_v20 = vadd.f32 %v699_v19, %v179_v15  ;;  %v1676_v24 = vpop.f32.mrb[17].mxu0 }
0x14c6   :  { %v702_v25 = vpop.f32.mrb[18].mxu0 }
0x14c7   :  { %v1677_v27 = vpop.f32.mrb[19].mxu0  ;;  %v1518_v37 = vmul.f32 -1.442695, %v705_v20 }
0x14cd   :  { %v929_v30 = vpop.f32.mrb[20].mxu0 }
0x14ce   :  { %v935_v31 = vadd.f32 %v929_v30, %v824_v28  ;;  %v1696_v32 = vpop.f32.mrb[21].mxu0 }
0x14cf   :  { %v932_v26 = vpop.f32.mrb[22].mxu0 }
0x14d0   :  { %v1532_v48 = vmul.f32 -1.442695, %v935_v31  ;;  %v1697_v33 = vpop.f32.mrb[23].mxu0 }
0x14d2   :  { %1823 = vpow2.f32 %v1532_v48 }
0x14dc   :  { %v1824_v10 = vpop.eup %1823 }
0x14dd   :  { %v939_v34 = vadd.f32 1.0, %v1824_v10  ;;  %v832_v10 = vadd.f32 %v2206_v43, %v2201_v39 }
0x14df   :  { %1825 = vrcp.f32 %v939_v34 }
0x14e0   :  { %1827 = vpow2.f32 %v1518_v37 }
0x14e9   :  { %v1826_v8 = vpop.eup %1825 }
0x14ea   :  { %v942_v4 = vmul.f32 2.0, %v1826_v8  ;;  %v1828_v38 = vpop.eup %1827  ;;  %v944_v42 = vmul.f32 %v1826_v8, %v2217_v2 }
0x14eb   :  { %v709_v41 = vadd.f32 1.0, %v1828_v38 }
0x14ec   :  { %v1533_v14 = vadd.f32 -1.0, %v942_v4 }
0x14ed   :  { %1829 = vrcp.f32 %v709_v41 }
0x14ee   :  { %946 = vrot.lane.b32.xlu0 %v1533_v14, %s1945_s1 }
0x14f7   :  { %v1830_v45 = vpop.eup %1829 }
0x14f8   :  { %v712_v46 = vmul.f32 2.0, %v1830_v45  ;;  %v714_v56 = vmul.f32 %v1830_v45, %v2214_v63 }
0x14fa   :  { %v1519_v49 = vadd.f32 -1.0, %v712_v46 }
0x1560   :  { %v947_v35 = vpop.permute.xlu0 %946 }
0x1561   :  { %v949_v36 = vmul.f32 %v1826_v8, %v947_v35 }
0x1563   :  { %951 = vrot.lane.b32.xlu1 %v949_v36, %s1947_s3 }
0x15d5   :  { %v952_v12 = vpop.permute.xlu1 %951 }
0x15d6   :  { %v954_v44 = vadd.f32 %v952_v12, %v944_v42 }
0x15d8   :  { %1831 = vtanh.f32 %v954_v44 }
0x15e2   :  { %v1832_v47 = vpop.eup %1831 }
0x15e3   :  { %957 = vrot.lane.b32.xlu0 %v1832_v47, %s1945_s1 }
0x15e7   :  { %716 = vrot.lane.b32.xlu0 %v1519_v49, %s1945_s1 }
0x1655   :  { %v958_v50 = vpop.permute.xlu0 %957 }
0x1656   :  { %v960_v51 = vmul.f32 %v1826_v8, %v958_v50 }
0x1658   :  { %v961_v52 = vpack.c.bf16 %v960_v51, %v960_v51 }
0x1659   :  { %v717_v53 = vpop.permute.xlu0 %716 }
0x165a   :  { %v719_v54 = vmul.f32 %v1830_v45, %v717_v53  ;;  %963 = vrot.lane.b32.xlu1 %v961_v52, %s1947_s3 }
0x165c   :  { %721 = vrot.lane.b32.xlu0 %v719_v54, %s1947_s3 }
0x16cc   :  { %v964_v55 = vpop.permute.xlu1 %963 }
0x16cd   :  { %1703 = vmatmul.mubr.msk.bf16.vlgmr.msra.gmra.mrb[24].mxu0 %vm223_vm3, %v964_v55 }
0x16ce   :  { %v722_v57 = vpop.permute.xlu0 %721  ;;  %1715 = vmatpush3.bf16.msra.mxu0 %v2225_v6  ;;  %1718 = vmatprep.mubr.msk.bf16.mxu0 %vm1949_vm2, %v1948_v22 }
0x16cf   :  { %v724_v58 = vadd.f32 %v722_v57, %v714_v56  ;;  %1716 = vmatprep.subr.bf16.mxu0 %v1948_v22 }
0x16d1   :  { %1833 = vtanh.f32 %v724_v58 }
0x16d2   :  { %1717 = vmatpush3.bf16.msra.mxu0 %v2232_v7 }
0x16d3   :  { %1730 = vmatprep.subr.bf16.mxu0 %v1948_v22 }
0x16db   :  { %v1834_v59 = vpop.eup %1833 }
0x16dc   :  { %727 = vrot.lane.b32.xlu0 %v1834_v59, %s1945_s1 }
0x16e0   :  { %758 = vrot.lane.b32.xlu0 %v733_v60, %s1947_s3 }
0x174e   :  { %v728_v61 = vpop.permute.xlu0 %727 }
0x174f   :  { %v730_v20 = vmul.f32 %v1830_v45, %v728_v61 }
0x1751   :  { %v734_v25 = vpack.c.bf16 %v730_v20, %v2236_v21 }
0x1752   :  { %v759_v63 = vpop.permute.xlu0 %758 }
0x1753   :  { %1686 = vmatprep.mubr.msk.bf16.mxu1 %vm223_vm3, %v759_v63 }
0x17a0   :  { %v1002_v1 = vpop.f32.mrb[24].mxu0 }
0x17a1   :  { %v1008_v2 = vadd.f32 %v1002_v1, %v829_v0  ;;  %v1704_v3 = vpop.f32.mrb[25].mxu0 }
0x17a2   :  { %v1005_v5 = vpop.f32.mrb[26].mxu0 }
0x17a3   :  { %v1535_v9 = vmul.f32 -1.442695, %v1008_v2  ;;  %v1705_v11 = vpop.f32.mrb[27].mxu0 }
0x17a5   :  { %1835 = vpow2.f32 %v1535_v9 }
0x17af   :  { %v1836_v13 = vpop.eup %1835 }
0x17b0   :  { %v1012_v16 = vadd.f32 1.0, %v1836_v13 }
0x17b2   :  { %1837 = vrcp.f32 %v1012_v16 }
0x17bc   :  { %v1838_v62 = vpop.eup %1837 }
0x17bd   :  { %v1015_v29 = vmul.f32 2.0, %v1838_v62  ;;  %v1017_v40 = vmul.f32 %v1838_v62, %v954_v44 }
0x17bf   :  { %v1536_v17 = vadd.f32 -1.0, %v1015_v29 }
0x17c1   :  { %1019 = vrot.lane.b32.xlu1 %v1536_v17, %s1945_s1 }
0x1833   :  { %v1020_v23 = vpop.permute.xlu1 %1019 }
0x1834   :  { %v1022_v18 = vmul.f32 %v1838_v62, %v1020_v23 }
0x1836   :  { %1024 = vrot.lane.b32.xlu1 %v1022_v18, %s1947_s3 }
0x18a8   :  { %v1025_v15 = vpop.permute.xlu1 %1024 }
0x18a9   :  { %v1027_v19 = vadd.f32 %v1025_v15, %v1017_v40 }
0x18ab   :  { %1839 = vtanh.f32 %v1027_v19 }
0x18b5   :  { %v1840_v24 = vpop.eup %1839 }
0x18b6   :  { %1030 = vrot.lane.b32.xlu1 %v1840_v24, %s1945_s1 }
0x18ba   :  { %760 = vrot.lane.b32.xlu1 %v734_v25, %s1947_s3 }
0x1928   :  { %v1031_v27 = vpop.permute.xlu1 %1030 }
0x1929   :  { %v1033_v28 = vmul.f32 %v1838_v62, %v1031_v27 }
0x192b   :  { %v1034_v30 = vpack.c.bf16 %v1033_v28, %v1033_v28 }
0x192c   :  { %v761_v31 = vpop.permute.xlu1 %760 }
0x192d   :  { %1036 = vrot.lane.b32.xlu0 %v1034_v30, %s1947_s3  ;;  %1687 = vmatmul.mubr.msk.bf16.gmra.mrb[20].mxu1 %vm223_vm3, %v761_v31 }
0x192e   :  { %1710 = vmatprep.mubr.msk.bf16.mxu1 %vm1949_vm2, %v1948_v22 }
0x199f   :  { %v1037_v32 = vpop.permute.xlu0 %1036 }
0x19a0   :  { %1711 = vmatmul.mubr.msk.bf16.vlgmr.msra.gmra.mrb[24].mxu1 %vm223_vm3, %v1037_v32 }
0x19a1   :  { %1723 = vmatpush3.bf16.msra.mxu1 %v2225_v6  ;;  %1726 = vmatprep.mubr.msk.bf16.mxu1 %vm1949_vm2, %v1948_v22 }
0x19a2   :  { %1724 = vmatprep.subr.bf16.mxu1 %v1948_v22 }
0x19a5   :  { %1725 = vmatpush3.bf16.msra.mxu1 %v2232_v7 }
0x19a6   :  { %1738 = vmatprep.subr.bf16.mxu1 %v1948_v22 }
0x1a00   :  { %v2298_v21 = vpop.f32.mrb[20].mxu1 }
0x1a01   :  { %v836_v26 = vpop.f32.mrb[21].mxu1 }
0x1a02   :  { %v2300_v48 = vpop.f32.mrb[22].mxu1  ;;  %v837_v54 = vadd.f32 %v2201_v39, %v836_v26 }
0x1a03   :  { %v2302_v33 = vpop.f32.mrb[23].mxu1 }
0x1a04   :  { %v840_v18 = vadd.f32 %v2201_v39, %v2302_v33 }
0x1a73   :  { %v1075_v34 = vpop.f32.mrb[24].mxu1 }
0x1a74   :  { %v1081_v8 = vadd.f32 %v1075_v34, %v832_v10  ;;  %v1712_v4 = vpop.f32.mrb[25].mxu1 }
0x1a75   :  { %v1078_v14 = vpop.f32.mrb[26].mxu1 }
0x1a76   :  { %v1538_v35 = vmul.f32 -1.442695, %v1081_v8  ;;  %v1713_v36 = vpop.f32.mrb[27].mxu1 }
0x1a77   :  { %v845_v36 = vadd.f32 %v2298_v21, %v2201_v39 }
0x1a78   :  { %1841 = vpow2.f32 %v1538_v35 }
0x1a82   :  { %v1842_v37 = vpop.eup %1841 }
0x1a83   :  { %v1085_v38 = vadd.f32 1.0, %v1842_v37 }
0x1a85   :  { %1843 = vrcp.f32 %v1085_v38 }
0x1a8f   :  { %v1844_v41 = vpop.eup %1843 }
0x1a90   :  { %v1088_v42 = vmul.f32 2.0, %v1844_v41  ;;  %v1090_v43 = vmul.f32 %v1844_v41, %v1027_v19 }
0x1a92   :  { %v1539_v12 = vadd.f32 -1.0, %v1088_v42 }
0x1a94   :  { %1092 = vrot.lane.b32.xlu1 %v1539_v12, %s1945_s1 }
0x1b06   :  { %v1093_v44 = vpop.permute.xlu1 %1092 }
0x1b07   :  { %v1095_v45 = vmul.f32 %v1844_v41, %v1093_v44 }
0x1b09   :  { %1097 = vrot.lane.b32.xlu0 %v1095_v45, %s1947_s3 }
0x1b7b   :  { %v1098_v46 = vpop.permute.xlu0 %1097 }
0x1b7c   :  { %v1100_v47 = vadd.f32 %v1098_v46, %v1090_v43 }
0x1b7e   :  { %1845 = vtanh.f32 %v1100_v47 }
0x1b88   :  { %v1846_v49 = vpop.eup %1845 }
0x1b89   :  { %1103 = vrot.lane.b32.xlu1 %v1846_v49, %s1945_s1 }
0x1bfb   :  { %v1104_v50 = vpop.permute.xlu1 %1103 }
0x1bfc   :  { %v1106_v51 = vmul.f32 %v1844_v41, %v1104_v50 }
0x1bfe   :  { %v1107_v52 = vpack.c.bf16 %v1106_v51, %v1106_v51 }
0x1c00   :  { %1109 = vrot.lane.b32.xlu0 %v1107_v52, %s1947_s3 }
0x1c72   :  { %v1110_v53 = vpop.permute.xlu0 %1109 }
0x1c73   :  { %1719 = vmatmul.mubr.msk.bf16.vlgmr.msra.gmra.mrb[28].mxu0 %vm223_vm3, %v1110_v53 }
0x1c74   :  { %1731 = vmatpush3.bf16.msra.mxu0 %v2225_v6  ;;  %1734 = vmatprep.mubr.msk.bf16.mxu0 %vm1949_vm2, %v1948_v22 }
0x1c75   :  { %1732 = vmatprep.subr.bf16.mxu0 %v1948_v22 }
0x1c78   :  { %1733 = vmatpush3.bf16.msra.mxu0 %v2232_v7 }
0x1c79   :  { %1746 = vmatprep.subr.bf16.mxu0 %v1948_v22 }
0x1d46   :  { %v1148_v55 = vpop.f32.mrb[28].mxu0 }
0x1d47   :  { %v1154_v56 = vadd.f32 %v1148_v55, %v837_v54  ;;  %v1720_v57 = vpop.f32.mrb[29].mxu0 }
0x1d48   :  { %v1151_v58 = vpop.f32.mrb[30].mxu0 }
0x1d49   :  { %v1541_v59 = vmul.f32 -1.442695, %v1154_v56  ;;  %v1721_v60 = vpop.f32.mrb[31].mxu0 }
0x1d4b   :  { %1847 = vpow2.f32 %v1541_v59  ;;  %v848_v59 = vadd.f32 %v2300_v48, %v2201_v39 }
0x1d55   :  { %v1848_v61 = vpop.eup %1847 }
0x1d56   :  { %v1158_v63 = vadd.f32 1.0, %v1848_v61 }
0x1d58   :  { %1849 = vrcp.f32 %v1158_v63 }
0x1d62   :  { %v1850_v0 = vpop.eup %1849 }
0x1d63   :  { %v1161_v1 = vmul.f32 2.0, %v1850_v0  ;;  %v1163_v9 = vmul.f32 %v1850_v0, %v1100_v47 }
0x1d65   :  { %v1542_v2 = vadd.f32 -1.0, %v1161_v1 }
0x1d67   :  { %1165 = vrot.lane.b32.xlu1 %v1542_v2, %s1945_s1 }
0x1dd9   :  { %v1166_v3 = vpop.permute.xlu1 %1165 }
0x1dda   :  { %v1168_v5 = vmul.f32 %v1850_v0, %v1166_v3 }
0x1ddc   :  { %1170 = vrot.lane.b32.xlu0 %v1168_v5, %s1947_s3 }
0x1e4e   :  { %v1171_v11 = vpop.permute.xlu0 %1170 }
0x1e4f   :  { %v1173_v13 = vadd.f32 %v1171_v11, %v1163_v9 }
0x1e51   :  { %1851 = vtanh.f32 %v1173_v13 }
0x1e5b   :  { %v1852_v16 = vpop.eup %1851 }
0x1e5c   :  { %1176 = vrot.lane.b32.xlu1 %v1852_v16, %s1945_s1 }
0x1ece   :  { %v1177_v62 = vpop.permute.xlu1 %1176 }
0x1ecf   :  { %v1179_v29 = vmul.f32 %v1850_v0, %v1177_v62 }
0x1ed1   :  { %v1180_v17 = vpack.c.bf16 %v1179_v29, %v1179_v29 }
0x1ed3   :  { %1182 = vrot.lane.b32.xlu0 %v1180_v17, %s1947_s3  ;;  %v1773_v17 = vld [vmem:[#allocation5] sm:$0xff]  }
0x1f45   :  { %v1183_v23 = vpop.permute.xlu0 %1182 }
0x1f46   :  { %1727 = vmatmul.mubr.msk.bf16.vlgmr.msra.gmra.mrb[28].mxu1 %vm223_vm3, %v1183_v23  ;;  %v1774_v23 = vld [vmem:[#allocation5 + $0x8] sm:$0xff]  }
0x1f47   :  { %1739 = vmatpush3.bf16.msra.mxu1 %v2225_v6  ;;  %1742 = vmatprep.mubr.msk.bf16.mxu1 %vm1949_vm2, %v1948_v22 }
0x1f48   :  { %1740 = vmatprep.subr.bf16.mxu1 %v1948_v22 }
0x1f4b   :  { %1741 = vmatpush3.bf16.msra.mxu1 %v2232_v7 }
0x2019   :  { %v1221_v40 = vpop.f32.mrb[28].mxu1 }
0x201a   :  { %v1227_v15 = vadd.f32 %v1221_v40, %v840_v18  ;;  %v1728_v19 = vpop.f32.mrb[29].mxu1 }
0x201b   :  { %v1224_v20 = vpop.f32.mrb[30].mxu1 }
0x201c   :  { %v1544_v24 = vmul.f32 -1.442695, %v1227_v15  ;;  %v1729_v25 = vpop.f32.mrb[31].mxu1 }
0x201e   :  { %1853 = vpow2.f32 %v1544_v24  ;;  %v1552_v24 = vld [vmem:[%s2375_s8] ss:$0 sm:$0xff] }
0x2028   :  { %v1854_v27 = vpop.eup %1853 }
0x2029   :  { %v1231_v28 = vadd.f32 1.0, %v1854_v27 }
0x202b   :  { %1855 = vrcp.f32 %v1231_v28 }
0x2035   :  { %v1856_v6 = vpop.eup %1855 }
0x2036   :  { %v1234_v30 = vmul.f32 2.0, %v1856_v6  ;;  %v1236_v26 = vmul.f32 %v1856_v6, %v1173_v13 }
0x2038   :  { %v1545_v31 = vadd.f32 -1.0, %v1234_v30 }
0x203a   :  { %1238 = vrot.lane.b32.xlu1 %v1545_v31, %s1945_s1 }
0x20ac   :  { %v1239_v32 = vpop.permute.xlu1 %1238 }
0x20ad   :  { %v1241_v7 = vmul.f32 %v1856_v6, %v1239_v32 }
0x20af   :  { %1243 = vrot.lane.b32.xlu0 %v1241_v7, %s1947_s3 }
0x2121   :  { %v1244_v33 = vpop.permute.xlu0 %1243 }
0x2122   :  { %v1246_v10 = vadd.f32 %v1244_v33, %v1236_v26 }
0x2124   :  { %1857 = vtanh.f32 %v1246_v10 }
0x212e   :  { %v1858_v34 = vpop.eup %1857 }
0x212f   :  { %1249 = vrot.lane.b32.xlu1 %v1858_v34, %s1945_s1 }
0x21a1   :  { %v1250_v8 = vpop.permute.xlu1 %1249 }
0x21a2   :  { %v1252_v4 = vmul.f32 %v1856_v6, %v1250_v8 }
0x21a4   :  { %v1253_v14 = vpack.c.bf16 %v1252_v4, %v1252_v4 }
0x21a6   :  { %1255 = vrot.lane.b32.xlu0 %v1253_v14, %s1947_s3 }
0x2218   :  { %v1256_v35 = vpop.permute.xlu0 %1255 }
0x2219   :  { %1735 = vmatmul.mubr.msk.bf16.vlgmr.msra.gmra.mrb[32].mxu0 %vm223_vm3, %v1256_v35 }
0x221a   :  { %1750 = vmatprep.mubr.msk.bf16.mxu0 %vm1949_vm2, %v1948_v22  ;;  %1747 = vmatpush3.bf16.msra.mxu0 %v1773_v17 }
0x221b   :  { %1748 = vmatprep.subr.bf16.mxu0 %v1948_v22 }
0x221e   :  { %1749 = vmatpush3.bf16.msra.mxu0 %v1774_v23 }
0x22ec   :  { %v1294_v37 = vpop.f32.mrb[32].mxu0 }
0x22ed   :  { %v1300_v38 = vadd.f32 %v1294_v37, %v845_v36  ;;  %v1736_v41 = vpop.f32.mrb[33].mxu0 }
0x22ee   :  { %v1297_v42 = vpop.f32.mrb[34].mxu0 }
0x22ef   :  { %v1547_v12 = vmul.f32 -1.442695, %v1300_v38  ;;  %v1737_v44 = vpop.f32.mrb[35].mxu0 }
0x22f1   :  { %1859 = vpow2.f32 %v1547_v12 }
0x22fb   :  { %v1860_v45 = vpop.eup %1859 }
0x22fc   :  { %v1304_v43 = vadd.f32 1.0, %v1860_v45 }
0x22fe   :  { %1861 = vrcp.f32 %v1304_v43 }
0x2308   :  { %v1862_v46 = vpop.eup %1861 }
0x2309   :  { %v1307_v47 = vmul.f32 2.0, %v1862_v46  ;;  %v1309_v21 = vmul.f32 %v1862_v46, %v1246_v10 }
0x230b   :  { %v1548_v49 = vadd.f32 -1.0, %v1307_v47 }
0x230d   :  { %1311 = vrot.lane.b32.xlu1 %v1548_v49, %s1945_s1 }
0x237f   :  { %v1312_v50 = vpop.permute.xlu1 %1311 }
0x2380   :  { %v1314_v51 = vmul.f32 %v1862_v46, %v1312_v50 }
0x2382   :  { %1316 = vrot.lane.b32.xlu0 %v1314_v51, %s1947_s3 }
0x23f4   :  { %v1317_v52 = vpop.permute.xlu0 %1316 }
0x23f5   :  { %v1319_v53 = vadd.f32 %v1317_v52, %v1309_v21 }
0x23f7   :  { %1863 = vtanh.f32 %v1319_v53 }
0x2401   :  { %v1864_v54 = vpop.eup %1863 }
0x2402   :  { %1322 = vrot.lane.b32.xlu1 %v1864_v54, %s1945_s1 }
0x2474   :  { %v1323_v55 = vpop.permute.xlu1 %1322 }
0x2475   :  { %v1325_v56 = vmul.f32 %v1862_v46, %v1323_v55 }
0x2477   :  { %v1326_v57 = vpack.c.bf16 %v1325_v56, %v1325_v56 }
0x2479   :  { %1328 = vrot.lane.b32.xlu0 %v1326_v57, %s1947_s3 }
0x24eb   :  { %v1329_v58 = vpop.permute.xlu0 %1328 }
0x24ec   :  { %1743 = vmatmul.mubr.msk.bf16.vlgmr.msra.gmra.mrb[32].mxu1 %vm223_vm3, %v1329_v58 }
0x25bf   :  { %v1367_v60 = vpop.f32.mrb[32].mxu1 }
0x25c0   :  { %v1373_v61 = vadd.f32 %v1367_v60, %v848_v59  ;;  %v1744_v63 = vpop.f32.mrb[33].mxu1 }
0x25c1   :  { %v1370_v0 = vpop.f32.mrb[34].mxu1 }
0x25c2   :  { %v1550_v1 = vmul.f32 -1.442695, %v1373_v61  ;;  %v1745_v2 = vpop.f32.mrb[35].mxu1 }
0x25c4   :  { %1865 = vpow2.f32 %v1550_v1 }
0x25ce   :  { %v1866_v3 = vpop.eup %1865 }
0x25cf   :  { %v1377_v5 = vadd.f32 1.0, %v1866_v3 }
0x25d1   :  { %1867 = vrcp.f32 %v1377_v5 }
0x25db   :  { %v1868_v9 = vpop.eup %1867 }
0x25dc   :  { %v1380_v11 = vmul.f32 2.0, %v1868_v9  ;;  %v1382_v39 = vmul.f32 %v1868_v9, %v1319_v53 }
0x25de   :  { %v1551_v13 = vadd.f32 -1.0, %v1380_v11 }
0x25e0   :  { %1384 = vrot.lane.b32.xlu1 %v1551_v13, %s1945_s1 }
0x2652   :  { %v1385_v16 = vpop.permute.xlu1 %1384 }
0x2653   :  { %v1387_v62 = vmul.f32 %v1868_v9, %v1385_v16 }
0x2655   :  { %1389 = vrot.lane.b32.xlu0 %v1387_v62, %s1947_s3 }
0x26c7   :  { %v1390_v48 = vpop.permute.xlu0 %1389 }
0x26c8   :  { %v1392_v29 = vadd.f32 %v1390_v48, %v1382_v39 }
0x26ca   :  { %1869 = vtanh.f32 %v1392_v29 }
0x26d4   :  { %v1870_v18 = vpop.eup %1869 }
0x26d5   :  { %1395 = vrot.lane.b32.xlu1 %v1870_v18, %s1945_s1  ;;  %s1915_s1 = scalar_lea.vmem %s1477_s14, 128 }
0x26d6   :  { %p1916_p2 = scmp.ne.s32.totalorder %s1477_s14, %s1915_s1  ;;  %p1921_p4 = scmp.lt.s32.totalorder %s1915_s1, %s1915_s1 }
0x26d8   :  { %p1922_p5 = por %p1921_p4, %p1920_p3 }
0x26da   :  { %p1923_p6 = pnand %p1922_p5, %p1916_p2 }
0x2747   :  { %v1396_v40 = vpop.permute.xlu1 %1395 }
0x2748   :  { %v1398_v15 = vmul.f32 %v1868_v9, %v1396_v40 }
0x274a   :  { %v1399_v19 = vpack.c.bf16 %v1398_v15, %v1398_v15 }
0x274c   :  { %1412 = vrot.lane.b32.xlu0 %v1399_v19, %s1947_s3 }
0x27be   :  { %v1413_v20 = vpop.permute.xlu0 %1412 }
0x27bf   :  { %1751 = vmatmul.mubr.msk.bf16.vlgmr.msra.gmra.mrb[36].mxu0 %vm223_vm3, %v1413_v20 }
0x2892   :  { %v1463_v25 = vpop.f32.mrb[36].mxu0 }
0x2893   :  { %v1464_v22 = vadd.f32 %v1552_v24, %v1463_v25  ;;  %v1752_v27 = vpop.f32.mrb[37].mxu0 }
0x2894   :  { %v1466_v28 = vpop.f32.mrb[38].mxu0 }
0x2895   :  { %1469 = vst [vmem:[#allocation7] sm:$0xff] %v1464_v22  ;;  %v1753_v6 = vpop.f32.mrb[39].mxu0 }
0x2896   :  { %1926 = shalt.err (!%p1923_p6)
}
0x2897   :  { %s1927_s8 = scalar_lea.hbm %s2376_s9, 128 }
0x2898   :  { %p1928_p7 = scmp.ne.s32.totalorder %s2376_s9, %s1927_s8  ;;  %p1931_p8 = scmp.lt.u32.totalorder %s1927_s8, %s2376_s9 }
0x289a   :  { %p1933_p9 = pnand %p1931_p8, %p1928_p7 }
0x289c   :  { %1936 = shalt.err (!%p1933_p9)
}
0x289d   :  { %1479 = dma.vmem_to_hbm [thread:$0]  %s1477_s14, 128, %s2376_s9, [#allocation4]  }
0x289e   :  { %1941 = dma.done.wait [#allocation4], 128  }
0x289f   :  { %1942 = vsyncadd [#allocation4], 4294967168 }
0x28a0   :  { %1483 = vsyncpa [#allocation3], 1 }
0x28a1   :  { %1484 = vsyncpa [#allocation6], 1 }
0x28a2   :  { %1485 = vsyncpa [#allocation4], 1 }

</bundles_post_ra>
